<compile_context>
chip_gen: v6e
topology: v6e:2x2x1
jax: 0.10.0
libtpu: 0.0.40
codegen_flags: <defaults>
</compile_context>

<pallas_src>
import functools

import jax
import jax.numpy as jnp
from jax import lax
from jax.experimental import pallas as pl
from jax.experimental.pallas import tpu as pltpu

_LANE = 128
_NEG_BIG = -1e30  # mask value for padded key positions


def _round_up(x, m):
    return ((x + m - 1) // m) * m


def _choose_tiles(seq):
    # 256-granular tiles feed the v6e/v7x 256-wide MXU; 128 is still fine on v5e.
    t = 256 if seq >= 256 else 128
    return t, t


def _flash_attn_kernel(x_q_ref, x_kv_ref, w_ref, o_ref,
                       q_sc, m_sc, l_sc, acc_sc,
                       *, proj_pad, seq, tk, needs_mask):
    # x_q_ref : (tq, Dp)      query-row tile of X (inp_dim zero-padded)
    # x_kv_ref: (tk, Dp)      key-row tile of X
    # w_ref   : (Dp, 3*Pp)    [Wq*scale | Wk | Wv], proj_dim zero-padded, resident
    # o_ref   : (tq, Pp)      output tile (real columns are [:proj_dim])
    j = pl.program_id(1)
    n_kv = pl.num_programs(1)
    cdt = x_q_ref.dtype  # compute dtype for MXU operands (bf16 stays bf16)

    @pl.when(j == 0)
    def _():
        # Project this query tile once per row-tile (scale already folded into Wq).
        q = jnp.dot(x_q_ref[...], w_ref[:, :proj_pad],
                    preferred_element_type=jnp.float32)
        q_sc[...] = q.astype(cdt)
        m_sc[...] = jnp.full_like(m_sc, -jnp.inf)
        l_sc[...] = jnp.zeros_like(l_sc)
        acc_sc[...] = jnp.zeros_like(acc_sc)

    # Fused K/V projection for this key tile: one MXU pass, static 128-aligned slices.
    kv = jnp.dot(x_kv_ref[...], w_ref[:, proj_pad:],
                 preferred_element_type=jnp.float32)                 # (tk, 2*Pp)
    k = kv[:, :proj_pad].astype(cdt)
    v = kv[:, proj_pad:].astype(cdt)

    # scores = Q_tile @ K_tile^T as a last-axis contraction (no materialized k.T).
    s = lax.dot_general(
        q_sc[...], k,
        dimension_numbers=(((1,), (1,)), ((), ())),
        preferred_element_type=jnp.float32,
    )                                                                # (tq, tk)

    if needs_mask:
        key_idx = j * tk + lax.broadcasted_iota(jnp.int32, s.shape, 1)
        s = jnp.where(key_idx < seq, s, _NEG_BIG)

    # Online (streaming) softmax update.
    m_prev = m_sc[...]
    m_new = jnp.maximum(m_prev, jnp.max(s, axis=-1, keepdims=True))
    alpha = jnp.exp(m_prev - m_new)
    p = jnp.exp(s - m_new)
    l_sc[...] = alpha * l_sc[...] + jnp.sum(p, axis=-1, keepdims=True)
    acc_sc[...] = alpha * acc_sc[...] + jnp.dot(
        p.astype(cdt), v, preferred_element_type=jnp.float32)
    m_sc[...] = m_new

    @pl.when(j == n_kv - 1)
    def _():
        o_ref[...] = (acc_sc[...] *
                      pl.reciprocal(l_sc[...], approx=True)).astype(o_ref.dtype)


def prepare_qkv_weights(w_q, w_k, w_v):
    """Pad Wq/Wk/Wv to lane-dense shapes, fold 1/sqrt(proj_dim) into Wq, concat.

    Call once and cache the result across forward calls (hoists the per-call
    pad/concat/scale out of the hot path).
    """
    inp_dim, proj_dim = w_q.shape
    inp_pad = _round_up(inp_dim, _LANE)
    proj_pad = _round_up(proj_dim, _LANE)
    scale = 1.0 / (float(proj_dim) ** 0.5)

    def _pad(w):
        return jnp.pad(w, ((0, inp_pad - inp_dim), (0, proj_pad - proj_dim)))

    w_qkv = jnp.concatenate([_pad(w_q) * scale, _pad(w_k), _pad(w_v)], axis=1)
    return w_qkv, proj_dim


def self_attention_prepared(inputs, w_qkv, proj_dim):
    """Attention forward using pre-padded/concatenated weights."""
    seq, inp_dim = inputs.shape
    inp_pad = w_qkv.shape[0]
    proj_pad = w_qkv.shape[1] // 3

    tq, tk = _choose_tiles(seq)
    seq_pad = _round_up(seq, max(tq, tk))
    needs_mask = seq_pad != seq

    # Zero-pad X (rows to the tile size, columns to the lane-dense width).
    x_p = jnp.pad(inputs, ((0, seq_pad - seq), (0, inp_pad - inp_dim)))

    n_q = seq_pad // tq
    n_kv = seq_pad // tk

    kernel = functools.partial(
        _flash_attn_kernel,
        proj_pad=proj_pad, seq=seq, tk=tk, needs_mask=needs_mask)

    # Advisory cost for the XLA scheduler (real element size, not hard-coded 4B).
    itemsize = jnp.dtype(inputs.dtype).itemsize
    flops = (2 * seq_pad * inp_pad * proj_pad                  # Q projection
             + 2 * n_q * seq_pad * inp_pad * 2 * proj_pad      # K/V projection per q-tile
             + 4 * seq_pad * seq_pad * proj_pad)               # QK^T + attn@V
    transcendentals = seq_pad * seq_pad + seq_pad
    bytes_accessed = itemsize * (n_q * tq * inp_pad            # X (query side)
                                 + n_q * seq_pad * inp_pad     # X (key side, per q-tile)
                                 + inp_pad * 3 * proj_pad      # weights (resident)
                                 + seq_pad * proj_pad)         # output

    z_pad = pl.pallas_call(
        kernel,
        out_shape=jax.ShapeDtypeStruct((seq_pad, proj_pad), inputs.dtype),
        grid_spec=pltpu.PrefetchScalarGridSpec(
            num_scalar_prefetch=0,
            grid=(n_q, n_kv),
            in_specs=[
                pl.BlockSpec((tq, inp_pad), lambda i, j: (i, 0)),       # X query tile
                pl.BlockSpec((tk, inp_pad), lambda i, j: (j, 0)),       # X key tile
                pl.BlockSpec((inp_pad, 3 * proj_pad), lambda i, j: (0, 0)),  # weights, resident
            ],
            out_specs=pl.BlockSpec((tq, proj_pad), lambda i, j: (i, 0)),
            scratch_shapes=[
                pltpu.VMEM((tq, proj_pad), inputs.dtype),  # cached Q tile (compute dtype)
                pltpu.VMEM((tq, 1), jnp.float32),          # running max m
                pltpu.VMEM((tq, 1), jnp.float32),          # running denom l
                pltpu.VMEM((tq, proj_pad), jnp.float32),   # running accumulator
            ],
        ),
        compiler_params=pltpu.CompilerParams(
            dimension_semantics=("parallel", "arbitrary"),
            vmem_limit_bytes=32 * 1024 * 1024,
        ),
        cost_estimate=pl.CostEstimate(
            flops=flops,
            transcendentals=transcendentals,
            bytes_accessed=bytes_accessed,
        ),
    )(x_p, x_p, w_qkv)

    return z_pad[:seq, :proj_dim]


def self_attention_v1(inputs, w_q, w_k, w_v):
    """Pallas equivalent of MySelfAttention_V1.forward.

    inputs: (seq, inp_dim); w_q/w_k/w_v: (inp_dim, proj_dim). Returns (seq, proj_dim).
    For repeated calls, hoist prepare_qkv_weights out and call self_attention_prepared.
    """
    w_qkv, proj_dim = prepare_qkv_weights(w_q, w_k, w_v)
    return self_attention_prepared(inputs, w_qkv, proj_dim)


def reference_self_attention(inputs, w_q, w_k, w_v):
    # Pure-JAX reference mirroring the PyTorch forward exactly.
    q = inputs @ w_q
    k = inputs @ w_k
    v = inputs @ w_v
    omega = q @ k.T
    attn = jax.nn.softmax(omega / (w_q.shape[1] ** 0.5), axis=-1)
    return attn @ v


if __name__ == "__main__":
    # Small shapes consistent with the module: seq=8 tokens, inp_dim=32, proj_dim=16.
    seq, inp_dim, proj_dim = 8, 32, 16

    key = jax.random.PRNGKey(0)
    k_x, k_q, k_k, k_v = jax.random.split(key, 4)

    # torch.rand -> uniform [0, 1).
    inputs = jax.random.uniform(k_x, (seq, inp_dim), dtype=jnp.float32)
    w_q = jax.random.uniform(k_q, (inp_dim, proj_dim), dtype=jnp.float32)
    w_k = jax.random.uniform(k_k, (inp_dim, proj_dim), dtype=jnp.float32)
    w_v = jax.random.uniform(k_v, (inp_dim, proj_dim), dtype=jnp.float32)

    z = self_attention_v1(inputs, w_q, w_k, w_v)
    z = jax.block_until_ready(z)

    z_ref = reference_self_attention(inputs, w_q, w_k, w_v)
    assert z.shape == (seq, proj_dim)
    # Tolerance accounts for the EUP approx-reciprocal in the softmax (~2^-12 rel).
    assert jnp.allclose(z, z_ref, atol=1e-2, rtol=1e-2), "Pallas output mismatch vs reference"

    print("KERNEL_OK")
</pallas_src>

<mosaic_0001>
module attributes {stable_mosaic.version = 11 : i64} {
  func.func @_flash_attn_kernel(%arg0: i32, %arg1: i32, %arg2: memref<128x128xf32, #tpu.memory_space<vmem>>, %arg3: memref<128x128xf32, #tpu.memory_space<vmem>>, %arg4: memref<128x384xf32, #tpu.memory_space<vmem>>, %arg5: memref<128x128xf32, #tpu.memory_space<vmem>>, %arg6: memref<128x128xf32, #tpu.memory_space<vmem>>, %arg7: memref<128x1xf32, #tpu.memory_space<vmem>>, %arg8: memref<128x1xf32, #tpu.memory_space<vmem>>, %arg9: memref<128x128xf32, #tpu.memory_space<vmem>>) attributes {dimension_semantics = [#tpu.dimension_semantics<parallel>, #tpu.dimension_semantics<arbitrary>], iteration_bounds = array<i64: 1, 1>, scalar_prefetch = 0 : i64, scratch_operands = 4 : i64, tpu.core_type = #tpu.core_type<tc>, window_params = [{transform_indices = @transform_0, window_bounds = array<i64: 128, 128>}, {transform_indices = @transform_1, window_bounds = array<i64: 128, 128>}, {pipeline_mode = #tpu.pipeline_mode<synchronous>, transform_indices = @transform_2, window_bounds = array<i64: 128, 384>}, {transform_indices = @transform_3, window_bounds = array<i64: 128, 128>}]} {
    %c0_i32 = arith.constant 0 : i32
    %0 = arith.cmpi eq, %arg1, %c0_i32 : i32
    %1 = arith.extui %0 : i1 to i32
    %c0_i32_0 = arith.constant 0 : i32
    %2 = arith.cmpi ne, %1, %c0_i32_0 : i32
    scf.if %2 {
      %c0_24 = arith.constant 0 : index
      %c0_25 = arith.constant 0 : index
      %43 = vector.load %arg2[%c0_24, %c0_25] : memref<128x128xf32, #tpu.memory_space<vmem>>, vector<128x128xf32>
      %c0_26 = arith.constant 0 : index
      %c0_27 = arith.constant 0 : index
      %44 = vector.load %arg4[%c0_26, %c0_27] : memref<128x384xf32, #tpu.memory_space<vmem>>, vector<128x128xf32>
      %cst_28 = arith.constant dense<0.000000e+00> : vector<128x128xf32>
      %45 = tpu.matmul %43, %44, %cst_28 {dimension_numbers = #tpu.dot_dimension_numbers<[1], [0], [0], [1], [0, 0, 1, 1], [], []>} : vector<128x128xf32>, vector<128x128xf32>, vector<128x128xf32> -> vector<128x128xf32>
      %c0_29 = arith.constant 0 : index
      %c0_30 = arith.constant 0 : index
      %46 = vector.load %arg6[%c0_29, %c0_30] : memref<128x128xf32, #tpu.memory_space<vmem>>, vector<128x128xf32>
      tpu.vector_store %arg6[%c0_29, %c0_30], %45 {strides = array<i32>} : memref<128x128xf32, #tpu.memory_space<vmem>>, vector<128x128xf32>,
      %cst_31 = arith.constant 0xFF800000 : f32
      %47 = vector.broadcast %cst_31 : f32 to vector<128x1xf32>
      %c0_32 = arith.constant 0 : index
      %c0_33 = arith.constant 0 : index
      %48 = vector.load %arg7[%c0_32, %c0_33] : memref<128x1xf32, #tpu.memory_space<vmem>>, vector<128x1xf32>
      tpu.vector_store %arg7[%c0_32, %c0_33], %47 {strides = array<i32>} : memref<128x1xf32, #tpu.memory_space<vmem>>, vector<128x1xf32>,
      %cst_34 = arith.constant 0.000000e+00 : f32
      %49 = vector.broadcast %cst_34 : f32 to vector<128x1xf32>
      %c0_35 = arith.constant 0 : index
      %c0_36 = arith.constant 0 : index
      %50 = vector.load %arg8[%c0_35, %c0_36] : memref<128x1xf32, #tpu.memory_space<vmem>>, vector<128x1xf32>
      tpu.vector_store %arg8[%c0_35, %c0_36], %49 {strides = array<i32>} : memref<128x1xf32, #tpu.memory_space<vmem>>, vector<128x1xf32>,
      %cst_37 = arith.constant 0.000000e+00 : f32
      %51 = vector.broadcast %cst_37 : f32 to vector<128x128xf32>
      %c0_38 = arith.constant 0 : index
      %c0_39 = arith.constant 0 : index
      %52 = vector.load %arg9[%c0_38, %c0_39] : memref<128x128xf32, #tpu.memory_space<vmem>>, vector<128x128xf32>
      tpu.vector_store %arg9[%c0_38, %c0_39], %51 {strides = array<i32>} : memref<128x128xf32, #tpu.memory_space<vmem>>, vector<128x128xf32>,
    } else {
    }
    %c0 = arith.constant 0 : index
    %c0_1 = arith.constant 0 : index
    %3 = vector.load %arg3[%c0, %c0_1] : memref<128x128xf32, #tpu.memory_space<vmem>>, vector<128x128xf32>
    %c0_2 = arith.constant 0 : index
    %c128 = arith.constant 128 : index
    %4 = vector.load %arg4[%c0_2, %c128] : memref<128x384xf32, #tpu.memory_space<vmem>>, vector<128x256xf32>
    %cst = arith.constant dense<0.000000e+00> : vector<128x256xf32>
    %5 = tpu.matmul %3, %4, %cst {dimension_numbers = #tpu.dot_dimension_numbers<[1], [0], [0], [1], [0, 0, 1, 1], [], []>} : vector<128x128xf32>, vector<128x256xf32>, vector<128x256xf32> -> vector<128x256xf32>
    %6 = vector.extract_strided_slice %5 {offsets = [0, 0], sizes = [128, 128], strides = [1, 1]} : vector<128x256xf32> to vector<128x128xf32>
    %7 = vector.extract_strided_slice %5 {offsets = [0, 128], sizes = [128, 128], strides = [1, 1]} : vector<128x256xf32> to vector<128x128xf32>
    %c0_3 = arith.constant 0 : index
    %c0_4 = arith.constant 0 : index
    %8 = vector.load %arg6[%c0_3, %c0_4] : memref<128x128xf32, #tpu.memory_space<vmem>>, vector<128x128xf32>
    %cst_5 = arith.constant dense<0.000000e+00> : vector<128x128xf32>
    %9 = tpu.matmul %8, %6, %cst_5 {dimension_numbers = #tpu.dot_dimension_numbers<[1], [1], [0], [0], [0, 0, 1, 0], [], []>} : vector<128x128xf32>, vector<128x128xf32>, vector<128x128xf32> -> vector<128x128xf32>
    %c128_i32 = arith.constant 128 : i32
    %10 = arith.muli %arg1, %c128_i32 : i32
    %11 = tpu.iota {dimensions = array<i32: 1>} : vector<128x128xi32>
    %12 = vector.broadcast %10 : i32 to vector<128x128xi32>
    %13 = arith.addi %12, %11 : vector<128x128xi32>
    %c8_i32 = arith.constant 8 : i32
    %14 = vector.broadcast %c8_i32 : i32 to vector<128x128xi32>
    %15 = arith.cmpi slt, %13, %14 : vector<128x128xi32>
    %cst_6 = arith.constant -1.000000e+30 : f32
    %16 = vector.broadcast %cst_6 : f32 to vector<128x128xf32>
    %17 = arith.select %15, %9, %16 : vector<128x128xi1>, vector<128x128xf32>
    %c0_7 = arith.constant 0 : index
    %c0_8 = arith.constant 0 : index
    %18 = vector.load %arg7[%c0_7, %c0_8] : memref<128x1xf32, #tpu.memory_space<vmem>>, vector<128x1xf32>
    %cst_9 = arith.constant dense<0xFF800000> : vector<128xf32>
    %19 = vector.multi_reduction <maximumf>, %17, %cst_9 [1] : vector<128x128xf32> to vector<128xf32>
    %20 = vector.shape_cast %19 : vector<128xf32> to vector<128x1xf32>
    %21 = arith.maximumf %18, %20 : vector<128x1xf32>
    %22 = arith.subf %18, %21 : vector<128x1xf32>
    %23 = math.exp %22 : vector<128x1xf32>
    %24 = vector.broadcast %21 : vector<128x1xf32> to vector<128x128xf32>
    %25 = arith.subf %17, %24 : vector<128x128xf32>
    %26 = math.exp %25 : vector<128x128xf32>
    %c0_10 = arith.constant 0 : index
    %c0_11 = arith.constant 0 : index
    %27 = vector.load %arg8[%c0_10, %c0_11] : memref<128x1xf32, #tpu.memory_space<vmem>>, vector<128x1xf32>
    %28 = arith.mulf %23, %27 : vector<128x1xf32>
    %cst_12 = arith.constant dense<0.000000e+00> : vector<128xf32>
    %29 = vector.multi_reduction <add>, %26, %cst_12 [1] : vector<128x128xf32> to vector<128xf32>
    %30 = vector.shape_cast %29 : vector<128xf32> to vector<128x1xf32>
    %31 = arith.addf %28, %30 : vector<128x1xf32>
    %c0_13 = arith.constant 0 : index
    %c0_14 = arith.constant 0 : index
    %32 = vector.load %arg8[%c0_13, %c0_14] : memref<128x1xf32, #tpu.memory_space<vmem>>, vector<128x1xf32>
    tpu.vector_store %arg8[%c0_13, %c0_14], %31 {strides = array<i32>} : memref<128x1xf32, #tpu.memory_space<vmem>>, vector<128x1xf32>,
    %c0_15 = arith.constant 0 : index
    %c0_16 = arith.constant 0 : index
    %33 = vector.load %arg9[%c0_15, %c0_16] : memref<128x128xf32, #tpu.memory_space<vmem>>, vector<128x128xf32>
    %34 = vector.broadcast %23 : vector<128x1xf32> to vector<128x128xf32>
    %35 = arith.mulf %34, %33 : vector<128x128xf32>
    %cst_17 = arith.constant dense<0.000000e+00> : vector<128x128xf32>
    %36 = tpu.matmul %26, %7, %cst_17 {dimension_numbers = #tpu.dot_dimension_numbers<[1], [0], [0], [1], [0, 0, 1, 1], [], []>} : vector<128x128xf32>, vector<128x128xf32>, vector<128x128xf32> -> vector<128x128xf32>
    %37 = arith.addf %35, %36 : vector<128x128xf32>
    %c0_18 = arith.constant 0 : index
    %c0_19 = arith.constant 0 : index
    %38 = vector.load %arg9[%c0_18, %c0_19] : memref<128x128xf32, #tpu.memory_space<vmem>>, vector<128x128xf32>
    tpu.vector_store %arg9[%c0_18, %c0_19], %37 {strides = array<i32>} : memref<128x128xf32, #tpu.memory_space<vmem>>, vector<128x128xf32>,
    %c0_20 = arith.constant 0 : index
    %c0_21 = arith.constant 0 : index
    %39 = vector.load %arg7[%c0_20, %c0_21] : memref<128x1xf32, #tpu.memory_space<vmem>>, vector<128x1xf32>
    tpu.vector_store %arg7[%c0_20, %c0_21], %21 {strides = array<i32>} : memref<128x1xf32, #tpu.memory_space<vmem>>, vector<128x1xf32>,
    %c0_i32_22 = arith.constant 0 : i32
    %40 = arith.cmpi eq, %arg1, %c0_i32_22 : i32
    %41 = arith.extui %40 : i1 to i32
    %c0_i32_23 = arith.constant 0 : i32
    %42 = arith.cmpi ne, %41, %c0_i32_23 : i32
    scf.if %42 {
      %c0_24 = arith.constant 0 : index
      %c0_25 = arith.constant 0 : index
      %43 = vector.load %arg9[%c0_24, %c0_25] : memref<128x128xf32, #tpu.memory_space<vmem>>, vector<128x128xf32>
      %c0_26 = arith.constant 0 : index
      %c0_27 = arith.constant 0 : index
      %44 = vector.load %arg8[%c0_26, %c0_27] : memref<128x1xf32, #tpu.memory_space<vmem>>, vector<128x1xf32>
      %45 = tpu.reciprocal %44 {approx = true} : vector<128x1xf32> -> vector<128x1xf32>
      %46 = vector.broadcast %45 : vector<128x1xf32> to vector<128x128xf32>
      %47 = arith.mulf %43, %46 : vector<128x128xf32>
      %c0_28 = arith.constant 0 : index
      %c0_29 = arith.constant 0 : index
      %48 = vector.load %arg5[%c0_28, %c0_29] : memref<128x128xf32, #tpu.memory_space<vmem>>, vector<128x128xf32>
      tpu.vector_store %arg5[%c0_28, %c0_29], %47 {strides = array<i32>} : memref<128x128xf32, #tpu.memory_space<vmem>>, vector<128x128xf32>,
    } else {
    }
    return
  }
  func.func @transform_0(%arg0: i32, %arg1: i32) -> (i32, i32) {
    %c0_i32 = arith.constant 0 : i32
    %c0_i32_0 = arith.constant 0 : i32
    return %arg0, %c0_i32 : i32, i32
  }
  func.func @transform_1(%arg0: i32, %arg1: i32) -> (i32, i32) {
    %c0_i32 = arith.constant 0 : i32
    %c0_i32_0 = arith.constant 0 : i32
    return %arg1, %c0_i32 : i32, i32
  }
  func.func @transform_2(%arg0: i32, %arg1: i32) -> (i32, i32) {
    %c0_i32 = arith.constant 0 : i32
    %c0_i32_0 = arith.constant 0 : i32
    %c0_i32_1 = arith.constant 0 : i32
    return %c0_i32, %c0_i32_0 : i32, i32
  }
  func.func @transform_3(%arg0: i32, %arg1: i32) -> (i32, i32) {
    %c0_i32 = arith.constant 0 : i32
    %c0_i32_0 = arith.constant 0 : i32
    return %arg0, %c0_i32 : i32, i32
  }
}

</mosaic_0001>

<bundles_post_ra>
// kernel: tpu_custom_call.1
= control target key start
LH: loop header
LB: loop body
LE: loop exit
PB: predicated region body
PF: predicated region fallthrough
CT: control target
= control target key end

     0   :  { %8 = vsyncpa [#allocation7], 0  ;;  %s2502_s0 = inlined_call_operand.hbm [shape: f32[128,128], index: 0, kind: input, shape index: {}]   ;;  %s2503_s1 = inlined_call_operand.hbm [shape: f32[128,128], index: 1, kind: input, shape index: {}]   ;;  %s2504_s2 = inlined_call_operand.hbm [shape: f32[128,384], index: 2, kind: input, shape index: {}]   ;;  %s2505_s3 = inlined_call_operand.hbm [shape: f32[128,128], index: 3, kind: output, shape index: {}]  }
   0x1   :  { %9 = vsyncpa [#allocation10], 0 }
   0x2   :  { %10 = vsyncpa [#allocation8], 0  ;;  %s1976_s12 = smov [#allocation9]   ;;  %s1977_s14 = smov [#allocation6]  }
   0x3   :  { %s28_s13 = sshll.u32 %s1976_s12, 4  ;;  %s16_s15 = sshll.u32 %s1977_s14, 4  ;;  %s29_s13 = int_to_ptr.vmem [resolvable:$true] %s28_s13  ;;  %s17_s15 = int_to_ptr.vmem [resolvable:$true] %s16_s15 }
   0x4   :  { %s1898_s16 = scalar_lea.vmem %s29_s13, 2048  ;;  %p1903_p1 = scmp.lt.s32.totalorder %s29_s13, %s29_s13 }
   0x5   :  { %p1899_p0 = scmp.ne.s32.totalorder %s29_s13, %s1898_s16  ;;  %p1904_p2 = scmp.lt.s32.totalorder %s1898_s16, %s1898_s16 }
   0x7   :  { %p1905_p3 = por %p1904_p2, %p1903_p1 }
   0x9   :  { %p1906_p4 = pnand %p1905_p3, %p1899_p0 }
   0xb   :  { %1909 = shalt.err (!%p1906_p4)
}
   0xc   :  { %s1978_s17 = smov 128   ;;  %s1979_s18 = smov 8  }
   0xd   :  { %34 = dma.hbm_to_vmem [thread:$0]  %s2503_s1, 2048, %s29_s13, [#allocation10], %s1978_s17, %s1978_s17, %s1979_s18  }
   0xe   :  { %s1918_s21 = scalar_lea.vmem %s17_s15, 2048  ;;  %p1923_p6 = scmp.lt.s32.totalorder %s17_s15, %s17_s15 }
   0xf   :  { %p1919_p5 = scmp.ne.s32.totalorder %s17_s15, %s1918_s21  ;;  %p1924_p7 = scmp.lt.s32.totalorder %s1918_s21, %s1918_s21 }
  0x11   :  { %p1925_p8 = por %p1924_p7, %p1923_p6 }
  0x13   :  { %p1926_p9 = pnand %p1925_p8, %p1919_p5 }
  0x15   :  { %1929 = shalt.err (!%p1926_p9)
}
  0x16   :  { %22 = dma.hbm_to_vmem [thread:$0]  %s2502_s0, 2048, %s17_s15, [#allocation7], %s1978_s17, %s1978_s17, %s1979_s18  }
  0x17   :  { %s1980_s24 = smov [#allocation11]  }
  0x18   :  { %s40_s25 = sshll.u32 %s1980_s24, 4  ;;  %s41_s25 = int_to_ptr.vmem [resolvable:$true] %s40_s25 }
  0x19   :  { %s1938_s26 = scalar_lea.vmem %s41_s25, 6144  ;;  %p1943_p11 = scmp.lt.s32.totalorder %s41_s25, %s41_s25 }
  0x1a   :  { %p1939_p10 = scmp.ne.s32.totalorder %s41_s25, %s1938_s26  ;;  %p1944_p12 = scmp.lt.s32.totalorder %s1938_s26, %s1938_s26 }
  0x1c   :  { %p1945_p13 = por %p1944_p12, %p1943_p11 }
  0x1e   :  { %p1946_p0 = pnand %p1945_p13, %p1939_p10 }
  0x20   :  { %1949 = shalt.err (!%p1946_p0)
}
  0x21   :  { %s1981_s1 = smov 384   ;;  %s1982_s27 = smov 24  }
  0x22   :  { %46 = dma.hbm_to_vmem [thread:$0]  %s2504_s2, 6144, %s41_s25, [#allocation10], %s1981_s1, %s1981_s1, %s1982_s27  }
  0x23   :  { %1970 = dma.done.wait [#allocation7], 2048  }
  0x24   :  { %1971 = vsyncadd [#allocation7], 4294965248 }
  0x25   :  { %1972 = dma.done.wait [#allocation10], 8192  }
  0x26   :  { %1973 = vsyncadd [#allocation10], 4294959104  ;;  %v1983_v0 = vmov 0.0   ;;  %v349_v1 = vld [vmem:[#allocation11 + $0x178] sm:$0xff]  ;;  %v348_v2 = vld [vmem:[#allocation11 + $0x170] sm:$0xff]  ;;  %vm253_vm0 = vcmask 7168  }
  0x27   :  { %414 = vmatprep.mubr.f32.mxu1 %v1983_v0  ;;  %v347_v3 = vld [vmem:[#allocation11 + $0x160] sm:$0xff]  ;;  %350 = vmatprep.subr.mxu1 %v349_v1  ;;  %v346_v4 = vld [vmem:[#allocation11 + $0x158] sm:$0xff]  ;;  %v345_v5 = vld [vmem:[#allocation11 + $0x148] sm:$0xff]  ;;  %270 = vst.msk [vmem:[#allocation4] sm:$0xff] %vm253_vm0, %v1983_v0  ;;  %s1986_s0 = smov [#allocation12]  }
  0x28   :  { %351 = vmatpush1.msra.mxu1 %v348_v2  ;;  %v344_v6 = vld [vmem:[#allocation11 + $0x140] sm:$0xff]  ;;  %v343_v7 = vld [vmem:[#allocation11 + $0x130] sm:$0xff]  ;;  %v342_v8 = vld [vmem:[#allocation11 + $0x128] sm:$0xff]  ;;  %271 = vst.msk [vmem:[#allocation4 + $0x8] sm:$0xff] %vm253_vm0, %v1983_v0  ;;  %s1504_s2 = sshll.u32 %s1986_s0, 4  ;;  %s1505_s2 = int_to_ptr.vmem [resolvable:$true] %s1504_s2 }
  0x29   :  { %352 = vmatprep.subr.mxu1 %v347_v3  ;;  %v341_v9 = vld [vmem:[#allocation11 + $0x118] sm:$0xff]  ;;  %v340_v10 = vld [vmem:[#allocation11 + $0x110] sm:$0xff]  ;;  %v339_v11 = vld [vmem:[#allocation11 + $0x100] sm:$0xff]  ;;  %272 = vst.msk [vmem:[#allocation4 + $0x10] sm:$0xff] %vm253_vm0, %v1983_v0  ;;  %s1950_s30 = scalar_lea.vmem %s1505_s2, 2048  ;;  %p1955_p2 = scmp.lt.s32.totalorder %s1505_s2, %s1505_s2 }
  0x2a   :  { %353 = vmatpush1.msra.mxu1 %v346_v4  ;;  %v338_v12 = vld [vmem:[#allocation11 + $0xf8] sm:$0xff]  ;;  %v337_v13 = vld [vmem:[#allocation11 + $0xe8] sm:$0xff]  ;;  %v336_v14 = vld [vmem:[#allocation11 + $0xe0] sm:$0xff]  ;;  %273 = vst.msk [vmem:[#allocation4 + $0x18] sm:$0xff] %vm253_vm0, %v1983_v0  ;;  %p1951_p1 = scmp.ne.s32.totalorder %s1505_s2, %s1950_s30  ;;  %p1956_p3 = scmp.lt.s32.totalorder %s1950_s30, %s1950_s30 }
  0x2b   :  { %354 = vmatprep.subr.mxu1 %v345_v5  ;;  %v335_v15 = vld [vmem:[#allocation11 + $0xd0] sm:$0xff]  ;;  %v334_v16 = vld [vmem:[#allocation11 + $0xc8] sm:$0xff]  ;;  %v333_v17 = vld [vmem:[#allocation11 + $0xb8] sm:$0xff]  ;;  %274 = vst.msk [vmem:[#allocation4 + $0x20] sm:$0xff] %vm253_vm0, %v1983_v0 }
  0x2c   :  { %355 = vmatpush1.msra.mxu1 %v344_v6  ;;  %v332_v18 = vld [vmem:[#allocation11 + $0xb0] sm:$0xff]  ;;  %v331_v19 = vld [vmem:[#allocation11 + $0xa0] sm:$0xff]  ;;  %v91_v20 = vld [vmem:[#allocation11 + $0x168] sm:$0xff]  ;;  %275 = vst.msk [vmem:[#allocation4 + $0x28] sm:$0xff] %vm253_vm0, %v1983_v0  ;;  %p1957_p4 = por %p1956_p3, %p1955_p2 }
  0x2d   :  { %356 = vmatprep.subr.mxu1 %v343_v7  ;;  %v90_v21 = vld [vmem:[#allocation11 + $0x150] sm:$0xff]  ;;  %v330_v22 = vld [vmem:[#allocation11 + $0x98] sm:$0xff]  ;;  %1613 = vmatprep.subr.mxu0 %v91_v20  ;;  %v329_v23 = vld [vmem:[#allocation11 + $0x88] sm:$0xff]  ;;  %276 = vst.msk [vmem:[#allocation4 + $0x30] sm:$0xff] %vm253_vm0, %v1983_v0 }
  0x2e   :  { %357 = vmatpush1.msra.mxu1 %v342_v8  ;;  %1614 = vmatpush3.msra.mxu0 %v91_v20  ;;  %v89_v24 = vld [vmem:[#allocation11 + $0x138] sm:$0xff]  ;;  %v328_v25 = vld [vmem:[#allocation11 + $0x80] sm:$0xff]  ;;  %v327_v26 = vld [vmem:[#allocation11 + $0x70] sm:$0xff]  ;;  %277 = vst.msk [vmem:[#allocation4 + $0x38] sm:$0xff] %vm253_vm0, %v1983_v0  ;;  %p1958_p5 = pnand %p1957_p4, %p1951_p1 }
  0x2f   :  { %358 = vmatprep.subr.mxu1 %v341_v9  ;;  %1615 = vmatprep.subr.mxu0 %v90_v21  ;;  %v88_v27 = vld [vmem:[#allocation11 + $0x120] sm:$0xff]  ;;  %v326_v28 = vld [vmem:[#allocation11 + $0x68] sm:$0xff]  ;;  %v325_v29 = vld [vmem:[#allocation11 + $0x58] sm:$0xff]  ;;  %278 = vst.msk [vmem:[#allocation4 + $0x40] sm:$0xff] %vm253_vm0, %v1983_v0 }
  0x30   :  { %359 = vmatpush1.msra.mxu1 %v340_v10  ;;  %1616 = vmatpush3.msra.mxu0 %v90_v21  ;;  %v87_v30 = vld [vmem:[#allocation11 + $0x108] sm:$0xff]  ;;  %v324_v31 = vld [vmem:[#allocation11 + $0x50] sm:$0xff]  ;;  %v323_v32 = vld [vmem:[#allocation11 + $0x40] sm:$0xff]  ;;  %279 = vst.msk [vmem:[#allocation4 + $0x48] sm:$0xff] %vm253_vm0, %v1983_v0 }
  0x31   :  { %360 = vmatprep.subr.mxu1 %v339_v11  ;;  %1617 = vmatprep.subr.mxu0 %v89_v24  ;;  %v86_v33 = vld [vmem:[#allocation11 + $0xf0] sm:$0xff]  ;;  %v322_v34 = vld [vmem:[#allocation11 + $0x38] sm:$0xff]  ;;  %v321_v35 = vld [vmem:[#allocation11 + $0x28] sm:$0xff]  ;;  %280 = vst.msk [vmem:[#allocation4 + $0x50] sm:$0xff] %vm253_vm0, %v1983_v0 }
  0x32   :  { %361 = vmatpush1.msra.mxu1 %v338_v12  ;;  %1618 = vmatpush3.msra.mxu0 %v89_v24  ;;  %v85_v36 = vld [vmem:[#allocation11 + $0xd8] sm:$0xff]  ;;  %v320_v37 = vld [vmem:[#allocation11 + $0x20] sm:$0xff]  ;;  %v319_v38 = vld [vmem:[#allocation11 + $0x10] sm:$0xff]  ;;  %281 = vst.msk [vmem:[#allocation4 + $0x58] sm:$0xff] %vm253_vm0, %v1983_v0 }
  0x33   :  { %362 = vmatprep.subr.mxu1 %v337_v13  ;;  %1619 = vmatprep.subr.mxu0 %v88_v27  ;;  %v84_v39 = vld [vmem:[#allocation11 + $0xc0] sm:$0xff]  ;;  %v318_v40 = vld [vmem:[#allocation11 + $0x8] sm:$0xff]  ;;  %v82_v43 = vld [vmem:[#allocation11 + $0x90] sm:$0xff]  ;;  %282 = vst.msk [vmem:[#allocation4 + $0x60] sm:$0xff] %vm253_vm0, %v1983_v0 }
  0x34   :  { %363 = vmatpush1.msra.mxu1 %v336_v14  ;;  %1620 = vmatpush3.msra.mxu0 %v88_v27  ;;  %v302_v41 = vld [vmem:[#allocation9] sm:$0xff]  ;;  %v83_v42 = vld [vmem:[#allocation11 + $0xa8] sm:$0xff]  ;;  %v81_v46 = vld [vmem:[#allocation11 + $0x78] sm:$0xff]  ;;  %283 = vst.msk [vmem:[#allocation4 + $0x68] sm:$0xff] %vm253_vm0, %v1983_v0 }
  0x35   :  { %364 = vmatprep.subr.mxu1 %v335_v15  ;;  %1621 = vmatprep.subr.mxu0 %v87_v30  ;;  %v60_v44 = vld [vmem:[#allocation6] sm:$0xff]  ;;  %v303_v45 = vld [vmem:[#allocation9 + $0x8] sm:$0xff]  ;;  %v304_v48 = vld [vmem:[#allocation9 + $0x10] sm:$0xff]  ;;  %284 = vst.msk [vmem:[#allocation4 + $0x70] sm:$0xff] %vm253_vm0, %v1983_v0 }
  0x36   :  { %365 = vmatpush1.msra.mxu1 %v334_v16  ;;  %1622 = vmatpush3.msra.mxu0 %v87_v30  ;;  %v80_v47 = vld [vmem:[#allocation11 + $0x60] sm:$0xff]  ;;  %v79_v49 = vld [vmem:[#allocation11 + $0x48] sm:$0xff]  ;;  %v78_v50 = vld [vmem:[#allocation11 + $0x30] sm:$0xff]  ;;  %285 = vst.msk [vmem:[#allocation4 + $0x78] sm:$0xff] %vm253_vm0, %v1983_v0 }
  0x37   :  { %366 = vmatprep.subr.mxu1 %v333_v17  ;;  %1623 = vmatprep.subr.mxu0 %v86_v33  ;;  %v305_v51 = vld [vmem:[#allocation9 + $0x18] sm:$0xff]  ;;  %v76_v53 = vld [vmem:[#allocation11] sm:$0xff]  ;;  %v61_v55 = vld [vmem:[#allocation6 + $0x8] sm:$0xff] }
  0x38   :  { %367 = vmatpush1.msra.mxu1 %v332_v18  ;;  %1624 = vmatpush3.msra.mxu0 %v86_v33  ;;  %v77_v52 = vld [vmem:[#allocation11 + $0x18] sm:$0xff]  ;;  %v306_v54 = vld [vmem:[#allocation9 + $0x20] sm:$0xff]  ;;  %v62_v56 = vld [vmem:[#allocation6 + $0x10] sm:$0xff] }
  0x39   :  { %368 = vmatprep.subr.mxu1 %v331_v19  ;;  %1625 = vmatprep.subr.mxu0 %v85_v36  ;;  %v307_v57 = vld [vmem:[#allocation9 + $0x28] sm:$0xff]  ;;  %v63_v58 = vld [vmem:[#allocation6 + $0x18] sm:$0xff]  ;;  %v64_v59 = vld [vmem:[#allocation6 + $0x20] sm:$0xff] }
  0x3a   :  { %369 = vmatpush1.msra.mxu1 %v330_v22  ;;  %1626 = vmatpush3.msra.mxu0 %v85_v36  ;;  %v308_v60 = vld [vmem:[#allocation9 + $0x30] sm:$0xff]  ;;  %v65_v61 = vld [vmem:[#allocation6 + $0x28] sm:$0xff]  ;;  %v309_v63 = vld [vmem:[#allocation9 + $0x38] sm:$0xff] }
  0x3b   :  { %370 = vmatprep.subr.mxu1 %v329_v23  ;;  %1627 = vmatprep.subr.mxu0 %v84_v39  ;;  %v66_v62 = vld [vmem:[#allocation6 + $0x30] sm:$0xff]  ;;  %v67_v1 = vld [vmem:[#allocation6 + $0x38] sm:$0xff]  ;;  %v68_v2 = vld [vmem:[#allocation6 + $0x40] sm:$0xff] }
  0x3c   :  { %371 = vmatpush1.msra.mxu1 %v328_v25  ;;  %1628 = vmatpush3.msra.mxu0 %v84_v39  ;;  %v310_v3 = vld [vmem:[#allocation9 + $0x40] sm:$0xff]  ;;  %v69_v4 = vld [vmem:[#allocation6 + $0x48] sm:$0xff]  ;;  %v70_v5 = vld [vmem:[#allocation6 + $0x50] sm:$0xff] }
  0x3d   :  { %372 = vmatprep.subr.mxu1 %v327_v26  ;;  %1629 = vmatprep.subr.mxu0 %v83_v42  ;;  %v311_v6 = vld [vmem:[#allocation9 + $0x48] sm:$0xff]  ;;  %v71_v7 = vld [vmem:[#allocation6 + $0x58] sm:$0xff]  ;;  %v72_v8 = vld [vmem:[#allocation6 + $0x60] sm:$0xff] }
  0x3e   :  { %373 = vmatpush1.msra.mxu1 %v326_v28  ;;  %1630 = vmatpush3.msra.mxu0 %v83_v42  ;;  %v312_v9 = vld [vmem:[#allocation9 + $0x50] sm:$0xff]  ;;  %v73_v10 = vld [vmem:[#allocation6 + $0x68] sm:$0xff]  ;;  %v313_v12 = vld [vmem:[#allocation9 + $0x58] sm:$0xff] }
  0x3f   :  { %374 = vmatprep.subr.mxu1 %v325_v29  ;;  %1631 = vmatprep.subr.mxu0 %v82_v43  ;;  %v74_v11 = vld [vmem:[#allocation6 + $0x70] sm:$0xff]  ;;  %v75_v13 = vld [vmem:[#allocation6 + $0x78] sm:$0xff]  ;;  %v314_v14 = vld [vmem:[#allocation9 + $0x60] sm:$0xff] }
  0x40   :  { %375 = vmatpush1.msra.mxu1 %v324_v31  ;;  %1645 = vmatprep.mubr.f32.mxu0 %v60_v44  ;;  %v315_v15 = vld [vmem:[#allocation9 + $0x68] sm:$0xff]  ;;  %v316_v16 = vld [vmem:[#allocation9 + $0x70] sm:$0xff]  ;;  %v317_v17 = vld [vmem:[#allocation9 + $0x78] sm:$0xff] }
  0x41   :  { %376 = vmatprep.subr.mxu1 %v323_v32  ;;  %1632 = vmatpush3.msra.mxu0 %v82_v43 }
  0x42   :  { %377 = vmatpush1.msra.mxu1 %v322_v34  ;;  %1633 = vmatprep.subr.mxu0 %v81_v46 }
  0x43   :  { %378 = vmatprep.subr.mxu1 %v321_v35  ;;  %1634 = vmatpush3.msra.mxu0 %v81_v46 }
  0x44   :  { %379 = vmatpush1.msra.mxu1 %v320_v37  ;;  %1635 = vmatprep.subr.mxu0 %v80_v47 }
  0x45   :  { %380 = vmatprep.subr.mxu1 %v319_v38  ;;  %1636 = vmatpush3.msra.mxu0 %v80_v47 }
  0x46   :  { %381 = vmatpush1.msra.mxu1 %v318_v40  ;;  %1637 = vmatprep.subr.mxu0 %v79_v49 }
  0x47   :  { %415 = vmatmul.mubr.f32.vlgmr.msra.gmra.mxu1 %v302_v41  ;;  %1638 = vmatpush3.msra.mxu0 %v79_v49 }
  0x48   :  { %420 = vmatprep.mubr.f32.mxu1 %v1983_v0  ;;  %1639 = vmatprep.subr.mxu0 %v78_v50 }
  0x49   :  { %1640 = vmatpush3.msra.mxu0 %v78_v50 }
  0x4a   :  { %1641 = vmatprep.subr.mxu0 %v77_v52 }
  0x4b   :  { %421 = vmatmul.mubr.f32.gmra.mxu1 %v303_v45  ;;  %1642 = vmatpush3.msra.mxu0 %v77_v52 }
  0x4c   :  { %426 = vmatprep.mubr.f32.mxu1 %v1983_v0  ;;  %1643 = vmatprep.subr.mxu0 %v76_v53 }
  0x4d   :  { %1644 = vmatpush3.msra.mxu0 %v76_v53 }
  0x4e   :  { %1646 = vmatmul.mubr.f32.vlgmr.msra.gmra.mxu0 %v61_v55 }
  0x4f   :  { %427 = vmatmul.mubr.f32.gmra.mxu1 %v304_v48  ;;  %1648 = vmatprep.mubr.f32.mxu0 %v62_v56 }
  0x50   :  { %432 = vmatprep.mubr.f32.mxu1 %v1983_v0 }
  0x52   :  { %1649 = vmatmul.mubr.f32.gmra.mxu0 %v63_v58 }
  0x53   :  { %433 = vmatmul.mubr.f32.gmra.mxu1 %v305_v51  ;;  %1651 = vmatprep.mubr.f32.mxu0 %v64_v59 }
  0x54   :  { %438 = vmatprep.mubr.f32.mxu1 %v1983_v0 }
  0x56   :  { %1652 = vmatmul.mubr.f32.gmra.mxu0 %v65_v61 }
  0x57   :  { %439 = vmatmul.mubr.f32.gmra.mxu1 %v306_v54  ;;  %1654 = vmatprep.mubr.f32.mxu0 %v66_v62 }
  0x58   :  { %444 = vmatprep.mubr.f32.mxu1 %v1983_v0 }
  0x5a   :  { %1655 = vmatmul.mubr.f32.gmra.mxu0 %v67_v1 }
  0x5b   :  { %445 = vmatmul.mubr.f32.gmra.mxu1 %v307_v57  ;;  %1657 = vmatprep.mubr.f32.mxu0 %v68_v2 }
  0x5c   :  { %450 = vmatprep.mubr.f32.mxu1 %v1983_v0 }
  0x5e   :  { %1658 = vmatmul.mubr.f32.gmra.mxu0 %v69_v4  ;;  %v673_v4 = vlaneseq }
  0x5f   :  { %451 = vmatmul.mubr.f32.gmra.mxu1 %v308_v60  ;;  %1660 = vmatprep.mubr.f32.mxu0 %v70_v5 }
  0x60   :  { %456 = vmatprep.mubr.f32.mxu1 %v1983_v0  ;;  %v674_v5 = vand.u32 127, %v673_v4 }
  0x62   :  { %1661 = vmatmul.mubr.f32.gmra.mxu0 %v71_v7  ;;  %vm677_vm1 = vcmp.lt.s32.totalorder %v674_v5, 8 }
  0x63   :  { %457 = vmatmul.mubr.f32.gmra.mxu1 %v309_v63  ;;  %1663 = vmatprep.mubr.f32.mxu0 %v72_v8 }
  0x64   :  { %462 = vmatprep.mubr.f32.mxu1 %v1983_v0 }
  0x66   :  { %1664 = vmatmul.mubr.f32.gmra.mxu0 %v73_v10 }
  0x67   :  { %463 = vmatmul.mubr.f32.gmra.mxu1 %v310_v3  ;;  %1666 = vmatprep.mubr.f32.mxu0 %v74_v11  ;;  %v1984_v3 = vmov -inf  }
  0x68   :  { %468 = vmatprep.mubr.f32.mxu1 %v1983_v0  ;;  %254 = vst.msk [vmem:[#allocation3] sm:$0xff] %vm253_vm0, %v1984_v3  ;;  %255 = vst.msk [vmem:[#allocation3 + $0x8] sm:$0xff] %vm253_vm0, %v1984_v3 }
  0x69   :  { %256 = vst.msk [vmem:[#allocation3 + $0x10] sm:$0xff] %vm253_vm0, %v1984_v3  ;;  %257 = vst.msk [vmem:[#allocation3 + $0x18] sm:$0xff] %vm253_vm0, %v1984_v3 }
  0x6a   :  { %1667 = vmatmul.mubr.f32.gmra.mxu0 %v75_v13  ;;  %258 = vst.msk [vmem:[#allocation3 + $0x20] sm:$0xff] %vm253_vm0, %v1984_v3  ;;  %259 = vst.msk [vmem:[#allocation3 + $0x28] sm:$0xff] %vm253_vm0, %v1984_v3 }
  0x6b   :  { %469 = vmatmul.mubr.f32.gmra.mxu1 %v311_v6  ;;  %260 = vst.msk [vmem:[#allocation3 + $0x30] sm:$0xff] %vm253_vm0, %v1984_v3  ;;  %261 = vst.msk [vmem:[#allocation3 + $0x38] sm:$0xff] %vm253_vm0, %v1984_v3 }
  0x6c   :  { %474 = vmatprep.mubr.f32.mxu1 %v1983_v0  ;;  %262 = vst.msk [vmem:[#allocation3 + $0x40] sm:$0xff] %vm253_vm0, %v1984_v3  ;;  %263 = vst.msk [vmem:[#allocation3 + $0x48] sm:$0xff] %vm253_vm0, %v1984_v3 }
  0x6d   :  { %264 = vst.msk [vmem:[#allocation3 + $0x50] sm:$0xff] %vm253_vm0, %v1984_v3  ;;  %265 = vst.msk [vmem:[#allocation3 + $0x58] sm:$0xff] %vm253_vm0, %v1984_v3 }
  0x6e   :  { %266 = vst.msk [vmem:[#allocation3 + $0x60] sm:$0xff] %vm253_vm0, %v1984_v3  ;;  %267 = vst.msk [vmem:[#allocation3 + $0x68] sm:$0xff] %vm253_vm0, %v1984_v3 }
  0x6f   :  { %475 = vmatmul.mubr.f32.gmra.mxu1 %v312_v9  ;;  %268 = vst.msk [vmem:[#allocation3 + $0x70] sm:$0xff] %vm253_vm0, %v1984_v3  ;;  %269 = vst.msk [vmem:[#allocation3 + $0x78] sm:$0xff] %vm253_vm0, %v1984_v3 }
  0x70   :  { %480 = vmatprep.mubr.f32.mxu1 %v1983_v0 }
  0x73   :  { %481 = vmatmul.mubr.f32.gmra.mxu1 %v313_v12  ;;  %v2265_v4 = vld [vmem:[#allocation3 + $0x40] sm:$0xff] }
  0x74   :  { %486 = vmatprep.mubr.f32.mxu1 %v1983_v0 }
  0x77   :  { %487 = vmatmul.mubr.f32.gmra.mxu1 %v314_v14 }
  0x78   :  { %492 = vmatprep.mubr.f32.mxu1 %v1983_v0 }
  0x7b   :  { %493 = vmatmul.mubr.f32.gmra.mxu1 %v315_v15 }
  0x7c   :  { %498 = vmatprep.mubr.f32.mxu1 %v1983_v0 }
  0x7f   :  { %499 = vmatmul.mubr.f32.gmra.mxu1 %v316_v16 }
  0x80   :  { %504 = vmatprep.mubr.f32.mxu1 %v1983_v0 }
  0x83   :  { %505 = vmatmul.mubr.f32.gmra.mxu1 %v317_v17 }
 0x107   :  { %v2038_v18 = vpop.f32.mrf.mxu1 }
 0x109   :  { %v2040_v19 = vpop.f32.mrf.mxu1 }
 0x10b   :  { %v2042_v20 = vpop.f32.mrf.mxu1 }
 0x10d   :  { %v2044_v21 = vpop.f32.mrf.mxu1 }
 0x10e   :  { %v2056_v27 = vpop.f32.mrf.mxu0 }
 0x10f   :  { %v2046_v22 = vpop.f32.mrf.mxu1 }
 0x110   :  { %v158_v29 = vpop.f32.mrf.mxu0 }
 0x111   :  { %v2048_v23 = vpop.f32.mrf.mxu1  ;;  %1701 = vmatprep.mubr.f32.mxu0 %v158_v29 }
 0x112   :  { %v1650_v52 = vpop.f32.mrf.mxu0 }
 0x113   :  { %v2050_v24 = vpop.f32.mrf.mxu1 }
 0x114   :  { %v168_v53 = vpop.f32.mrf.mxu0 }
 0x115   :  { %v2052_v25 = vpop.f32.mrf.mxu1 }
 0x116   :  { %v1653_v54 = vpop.f32.mrf.mxu0 }
 0x117   :  { %v2054_v26 = vpop.f32.mrf.mxu1 }
 0x118   :  { %v178_v55 = vpop.f32.mrf.mxu0 }
 0x119   :  { %v442_v28 = vpop.f32.mrf.mxu1 }
 0x11a   :  { %v1656_v56 = vpop.f32.mrf.mxu0 }
 0x11b   :  { %v2058_v30 = vpop.f32.mrf.mxu1 }
 0x11c   :  { %v188_v57 = vpop.f32.mrf.mxu0 }
 0x11d   :  { %v448_v31 = vpop.f32.mrf.mxu1 }
 0x11e   :  { %v1659_v58 = vpop.f32.mrf.mxu0 }
 0x11f   :  { %v2060_v32 = vpop.f32.mrf.mxu1 }
 0x120   :  { %v198_v59 = vpop.f32.mrf.mxu0 }
 0x121   :  { %v454_v33 = vpop.f32.mrf.mxu1 }
 0x122   :  { %v1662_v60 = vpop.f32.mrf.mxu0 }
 0x123   :  { %v2062_v34 = vpop.f32.mrf.mxu1 }
 0x124   :  { %v208_v61 = vpop.f32.mrf.mxu0 }
 0x125   :  { %v460_v35 = vpop.f32.mrf.mxu1 }
 0x126   :  { %v1665_v62 = vpop.f32.mrf.mxu0 }
 0x127   :  { %v464_v36 = vpop.f32.mrf.mxu1 }
 0x128   :  { %v218_v63 = vpop.f32.mrf.mxu0 }
 0x129   :  { %v466_v37 = vpop.f32.mrf.mxu1 }
 0x12a   :  { %v1668_v1 = vpop.f32.mrf.mxu0 }
 0x12b   :  { %v470_v38 = vpop.f32.mrf.mxu1 }
 0x12c   :  { %v228_v2 = vpop.f32.mrf.mxu0 }
 0x12d   :  { %v472_v39 = vpop.f32.mrf.mxu1 }
 0x12f   :  { %v476_v40 = vpop.f32.mrf.mxu1 }
 0x131   :  { %v478_v41 = vpop.f32.mrf.mxu1 }
 0x133   :  { %v482_v42 = vpop.f32.mrf.mxu1 }
 0x135   :  { %v484_v43 = vpop.f32.mrf.mxu1 }
 0x137   :  { %v488_v44 = vpop.f32.mrf.mxu1 }
 0x139   :  { %v490_v45 = vpop.f32.mrf.mxu1 }
 0x13b   :  { %v494_v46 = vpop.f32.mrf.mxu1 }
 0x13d   :  { %v496_v47 = vpop.f32.mrf.mxu1 }
 0x13f   :  { %v500_v48 = vpop.f32.mrf.mxu1 }
 0x141   :  { %v502_v49 = vpop.f32.mrf.mxu1 }
 0x143   :  { %v506_v50 = vpop.f32.mrf.mxu1 }
 0x144   :  { %1669 = vmatprep.subr.mxu0 %v506_v50 }
 0x145   :  { %v508_v51 = vpop.f32.mrf.mxu1  ;;  %1670 = vmatpush3.xpose.msra.mxu0 %v506_v50 }
 0x146   :  { %1671 = vmatprep.subr.mxu0 %v500_v48  ;;  %1725 = vmatprep.subr.mxu1 %v508_v51 }
 0x147   :  { %1726 = vmatpush3.msra.mxu1 %v508_v51  ;;  %v2227_v51 = vld [vmem:[#allocation3 + $0x20] sm:$0xff] }
 0x148   :  { %1727 = vmatprep.subr.mxu1 %v502_v49 }
 0x149   :  { %1672 = vmatpush3.xpose.msra.mxu0 %v500_v48  ;;  %1728 = vmatpush3.msra.mxu1 %v502_v49 }
 0x14a   :  { %1673 = vmatprep.subr.mxu0 %v494_v46  ;;  %1729 = vmatprep.subr.mxu1 %v496_v47 }
 0x14b   :  { %1730 = vmatpush3.msra.mxu1 %v496_v47  ;;  %v2218_v47 = vld [vmem:[#allocation3 + $0x10] sm:$0xff] }
 0x14c   :  { %1731 = vmatprep.subr.mxu1 %v490_v45 }
 0x14d   :  { %1674 = vmatpush3.xpose.msra.mxu0 %v494_v46  ;;  %1732 = vmatpush3.msra.mxu1 %v490_v45 }
 0x14e   :  { %1675 = vmatprep.subr.mxu0 %v488_v44  ;;  %1733 = vmatprep.subr.mxu1 %v484_v43 }
 0x14f   :  { %1734 = vmatpush3.msra.mxu1 %v484_v43  ;;  %v2208_v43 = vld [vmem:[#allocation3 + $0x8] sm:$0xff] }
 0x150   :  { %1735 = vmatprep.subr.mxu1 %v478_v41 }
 0x151   :  { %1676 = vmatpush3.xpose.msra.mxu0 %v488_v44  ;;  %1736 = vmatpush3.msra.mxu1 %v478_v41 }
 0x152   :  { %1677 = vmatprep.subr.mxu0 %v482_v42  ;;  %1737 = vmatprep.subr.mxu1 %v472_v39 }
 0x153   :  { %1738 = vmatpush3.msra.mxu1 %v472_v39 }
 0x154   :  { %1739 = vmatprep.subr.mxu1 %v466_v37 }
 0x155   :  { %1678 = vmatpush3.xpose.msra.mxu0 %v482_v42  ;;  %1740 = vmatpush3.msra.mxu1 %v466_v37 }
 0x156   :  { %1679 = vmatprep.subr.mxu0 %v476_v40  ;;  %1741 = vmatprep.subr.mxu1 %v460_v35 }
 0x157   :  { %1742 = vmatpush3.msra.mxu1 %v460_v35 }
 0x158   :  { %1743 = vmatprep.subr.mxu1 %v454_v33 }
 0x159   :  { %1680 = vmatpush3.xpose.msra.mxu0 %v476_v40  ;;  %1744 = vmatpush3.msra.mxu1 %v454_v33  ;;  %v2203_v40 = vld [vmem:[#allocation3 + $0x18] sm:$0xff] }
 0x15a   :  { %1681 = vmatprep.subr.mxu0 %v470_v38  ;;  %1745 = vmatprep.subr.mxu1 %v448_v31 }
 0x15b   :  { %1746 = vmatpush3.msra.mxu1 %v448_v31 }
 0x15c   :  { %1747 = vmatprep.subr.mxu1 %v442_v28 }
 0x15d   :  { %1682 = vmatpush3.xpose.msra.mxu0 %v470_v38  ;;  %1748 = vmatpush3.msra.mxu1 %v442_v28  ;;  %v2201_v38 = vld [vmem:[#allocation3] sm:$0xff] }
 0x15e   :  { %1683 = vmatprep.subr.mxu0 %v464_v36  ;;  %1749 = vmatprep.subr.mxu1 %v2052_v25 }
 0x15f   :  { %1750 = vmatpush3.msra.mxu1 %v2052_v25 }
 0x160   :  { %1751 = vmatprep.subr.mxu1 %v2048_v23 }
 0x161   :  { %1684 = vmatpush3.xpose.msra.mxu0 %v464_v36  ;;  %1752 = vmatpush3.msra.mxu1 %v2048_v23 }
 0x162   :  { %1685 = vmatprep.subr.mxu0 %v2062_v34  ;;  %1753 = vmatprep.subr.mxu1 %v2044_v21 }
 0x163   :  { %1754 = vmatpush3.msra.mxu1 %v2044_v21  ;;  %v1985_v21 = vmov 0  }
 0x164   :  { %1755 = vmatprep.subr.mxu1 %v2040_v19  ;;  %1792 = vset.pattern.permute.xlu0 %v1985_v21 }
 0x165   :  { %1686 = vmatpush3.xpose.msra.mxu0 %v2062_v34  ;;  %1756 = vmatpush3.msra.mxu1 %v2040_v19 }
 0x166   :  { %1687 = vmatprep.subr.mxu0 %v2060_v32  ;;  %1793 = vset.pattern.permute.xlu1 %v1985_v21 }
 0x169   :  { %1688 = vmatpush3.xpose.msra.mxu0 %v2060_v32 }
 0x16a   :  { %1689 = vmatprep.subr.mxu0 %v2058_v30 }
 0x16d   :  { %1690 = vmatpush3.xpose.msra.mxu0 %v2058_v30 }
 0x16e   :  { %1691 = vmatprep.subr.mxu0 %v2054_v26 }
 0x171   :  { %1692 = vmatpush3.xpose.msra.mxu0 %v2054_v26 }
 0x172   :  { %1693 = vmatprep.subr.mxu0 %v2050_v24 }
 0x175   :  { %1694 = vmatpush3.xpose.msra.mxu0 %v2050_v24 }
 0x176   :  { %1695 = vmatprep.subr.mxu0 %v2046_v22 }
 0x179   :  { %1696 = vmatpush3.xpose.msra.mxu0 %v2046_v22 }
 0x17a   :  { %1697 = vmatprep.subr.mxu0 %v2042_v20 }
 0x17d   :  { %1698 = vmatpush3.xpose.msra.mxu0 %v2042_v20 }
 0x17e   :  { %1699 = vmatprep.subr.mxu0 %v2038_v18 }
 0x181   :  { %1700 = vmatpush3.xpose.msra.mxu0 %v2038_v18 }
 0x184   :  { %1702 = vmatmul.mubr.f32.vlgmr.msra.gmra.mxu0 %v2056_v27 }
 0x185   :  { %1704 = vmatprep.mubr.f32.mxu0 %v168_v53 }
 0x188   :  { %1705 = vmatmul.mubr.f32.gmra.mxu0 %v1650_v52 }
 0x189   :  { %1707 = vmatprep.mubr.f32.mxu0 %v178_v55 }
 0x18c   :  { %1708 = vmatmul.mubr.f32.gmra.mxu0 %v1653_v54  ;;  %v2237_v54 = vld [vmem:[#allocation3 + $0x28] sm:$0xff] }
 0x18d   :  { %1710 = vmatprep.mubr.f32.mxu0 %v188_v57 }
 0x190   :  { %1711 = vmatmul.mubr.f32.gmra.mxu0 %v1656_v56 }
 0x191   :  { %1713 = vmatprep.mubr.f32.mxu0 %v198_v59  ;;  %v2246_v59 = vld [vmem:[#allocation3 + $0x30] sm:$0xff] }
 0x194   :  { %1714 = vmatmul.mubr.f32.gmra.mxu0 %v1659_v58 }
 0x195   :  { %1716 = vmatprep.mubr.f32.mxu0 %v208_v61 }
 0x198   :  { %1717 = vmatmul.mubr.f32.gmra.mxu0 %v1662_v60 }
 0x199   :  { %1719 = vmatprep.mubr.f32.mxu0 %v218_v63 }
 0x19c   :  { %1720 = vmatmul.mubr.f32.gmra.mxu0 %v1665_v62  ;;  %v2256_v62 = vld [vmem:[#allocation3 + $0x38] sm:$0xff] }
 0x19d   :  { %1722 = vmatprep.mubr.f32.mxu0 %v228_v2 }
 0x1a0   :  { %1723 = vmatmul.mubr.f32.gmra.mxu0 %v1668_v1 }
 0x244   :  { %v1703_v6 = vpop.f32.mrf.mxu0 }
 0x245   :  { %v2146_v12 = vsel %vm677_vm1, %v1703_v6, -1e+30 }
 0x246   :  { %v593_v7 = vpop.f32.mrf.mxu0 }
 0x247   :  { %v2138_v8 = vsel %vm677_vm1, %v593_v7, -1e+30  ;;  %v2275_v7 = vld [vmem:[#allocation3 + $0x48] sm:$0xff] }
 0x248   :  { %710 = vmax.xlane.f32.xlu0 %v2138_v8  ;;  %v1706_v9 = vpop.f32.mrf.mxu0 }
 0x249   :  { %v2142_v10 = vsel %vm677_vm1, %v1706_v9, -1e+30 }
 0x24a   :  { %716 = vmax.xlane.f32.xlu1 %v2142_v10  ;;  %v603_v11 = vpop.f32.mrf.mxu0 }
 0x24b   :  { %v2149_v0 = vsel %vm677_vm1, %v603_v11, -1e+30 }
 0x24c   :  { %712 = vmax.xlane.f32.xlu0 %v2146_v12  ;;  %v1709_v13 = vpop.f32.mrf.mxu0 }
 0x24d   :  { %v2154_v15 = vsel %vm677_vm1, %v1709_v13, -1e+30 }
 0x24e   :  { %714 = vmax.xlane.f32.xlu1 %v2149_v0  ;;  %v613_v14 = vpop.f32.mrf.mxu0 }
 0x24f   :  { %v2157_v16 = vsel %vm677_vm1, %v613_v14, -1e+30 }
 0x250   :  { %v1712_v17 = vpop.f32.mrf.mxu0  ;;  %718 = vmax.xlane.f32.xlu0 %v2157_v16 }
 0x251   :  { %v2162_v19 = vsel %vm677_vm1, %v1712_v17, -1e+30  ;;  %v2284_v17 = vld [vmem:[#allocation3 + $0x50] sm:$0xff] }
 0x252   :  { %720 = vmax.xlane.f32.xlu1 %v2154_v15  ;;  %v623_v18 = vpop.f32.mrf.mxu0 }
 0x253   :  { %v2165_v20 = vsel %vm677_vm1, %v623_v18, -1e+30 }
 0x254   :  { %v1715_v22 = vpop.f32.mrf.mxu0  ;;  %722 = vmax.xlane.f32.xlu0 %v2165_v20 }
 0x255   :  { %v2170_v24 = vsel %vm677_vm1, %v1715_v22, -1e+30  ;;  %v2294_v22 = vld [vmem:[#allocation3 + $0x58] sm:$0xff] }
 0x256   :  { %724 = vmax.xlane.f32.xlu1 %v2162_v19  ;;  %v633_v23 = vpop.f32.mrf.mxu0 }
 0x257   :  { %v2173_v25 = vsel %vm677_vm1, %v633_v23, -1e+30 }
 0x258   :  { %v1718_v26 = vpop.f32.mrf.mxu0  ;;  %726 = vmax.xlane.f32.xlu0 %v2173_v25 }
 0x259   :  { %v2178_v28 = vsel %vm677_vm1, %v1718_v26, -1e+30 }
 0x25a   :  { %728 = vmax.xlane.f32.xlu1 %v2170_v24  ;;  %v643_v27 = vpop.f32.mrf.mxu0 }
 0x25b   :  { %v2181_v29 = vsel %vm677_vm1, %v643_v27, -1e+30 }
 0x25c   :  { %v1721_v30 = vpop.f32.mrf.mxu0  ;;  %730 = vmax.xlane.f32.xlu0 %v2181_v29 }
 0x25d   :  { %v2186_v32 = vsel %vm677_vm1, %v1721_v30, -1e+30 }
 0x25e   :  { %732 = vmax.xlane.f32.xlu1 %v2178_v28  ;;  %v653_v31 = vpop.f32.mrf.mxu0 }
 0x25f   :  { %v2189_v33 = vsel %vm677_vm1, %v653_v31, -1e+30  ;;  %v2304_v31 = vld [vmem:[#allocation3 + $0x60] sm:$0xff] }
 0x260   :  { %v1724_v34 = vpop.f32.mrf.mxu0  ;;  %734 = vmax.xlane.f32.xlu0 %v2189_v33 }
 0x261   :  { %v2194_v36 = vsel %vm677_vm1, %v1724_v34, -1e+30 }
 0x262   :  { %736 = vmax.xlane.f32.xlu1 %v2186_v32  ;;  %v663_v35 = vpop.f32.mrf.mxu0 }
 0x263   :  { %v2197_v37 = vsel %vm677_vm1, %v663_v35, -1e+30 }
 0x264   :  { %738 = vmax.xlane.f32.xlu0 %v2197_v37 }
 0x266   :  { %740 = vmax.xlane.f32.xlu1 %v2194_v36 }
 0x2d1   :  { %v711_v39 = vpop.xlane.xlu0 %710 }
 0x2d2   :  { %v2206_v41 = vmax.f32 %v2201_v38, %v711_v39  ;;  %v2314_v39 = vld [vmem:[#allocation3 + $0x68] sm:$0xff] }
 0x2d3   :  { %v717_v42 = vpop.xlane.xlu1 %716 }
 0x2d4   :  { %v758_v44 = vsub.f32 %v2201_v38, %v2206_v41  ;;  %1320 = vst.msk [vmem:[#allocation3] sm:$0xff] %vm253_vm0, %v2206_v41  ;;  %v2215_v45 = vmax.f32 %v2203_v40, %v717_v42  ;;  %808 = vperm.xlu0 %1792, %v2206_v41  }
 0x2d5   :  { %v713_v46 = vpop.xlane.xlu0 %712 }
 0x2d6   :  { %1323 = vst.msk [vmem:[#allocation3 + $0x18] sm:$0xff] %vm253_vm0, %v2215_v45  ;;  %v2225_v49 = vmax.f32 %v2208_v43, %v713_v46 }
 0x2d7   :  { %v715_v50 = vpop.xlane.xlu1 %714 }
 0x2d8   :  { %v759_v52 = vsub.f32 %v2208_v43, %v2225_v49  ;;  %1321 = vst.msk [vmem:[#allocation3 + $0x8] sm:$0xff] %vm253_vm0, %v2225_v49  ;;  %v2234_v53 = vmax.f32 %v2218_v47, %v715_v50  ;;  %813 = vperm.xlu1 %1793, %v2225_v49  }
 0x2d9   :  { %v719_v55 = vpop.xlane.xlu0 %718 }
 0x2da   :  { %v760_v56 = vsub.f32 %v2218_v47, %v2234_v53  ;;  %1322 = vst.msk [vmem:[#allocation3 + $0x10] sm:$0xff] %vm253_vm0, %v2234_v53  ;;  %v2244_v57 = vmax.f32 %v2227_v51, %v719_v55 }
 0x2db   :  { %v721_v58 = vpop.xlane.xlu1 %720 }
 0x2dc   :  { %v2249_v60 = vmax.f32 %v2237_v54, %v721_v58  ;;  %823 = vperm.xlu1 %1793, %v2215_v45   ;;  %1324 = vst.msk [vmem:[#allocation3 + $0x20] sm:$0xff] %vm253_vm0, %v2244_v57  ;;  %v2324_v58 = vld [vmem:[#allocation3 + $0x70] sm:$0xff]  ;;  %v2506_v43 = vsub.f32 %v2227_v51, %v2244_v57 }
 0x2dd   :  { %v723_v63 = vpop.xlane.xlu0 %722 }
 0x2de   :  { %1325 = vst.msk [vmem:[#allocation3 + $0x28] sm:$0xff] %vm253_vm0, %v2249_v60  ;;  %v2263_v2 = vmax.f32 %v2246_v59, %v723_v63  ;;  %v782_v49 = vmul.f32 1.442695, %v2506_v43  ;;  %v2509_v38 = vsub.f32 %v2237_v54, %v2249_v60 }
 0x2df   :  { %v725_v3 = vpop.xlane.xlu1 %724 }
 0x2e0   :  { %v2268_v5 = vmax.f32 %v2256_v62, %v725_v3  ;;  %818 = vperm.xlu1 %1793, %v2234_v53   ;;  %1326 = vst.msk [vmem:[#allocation3 + $0x30] sm:$0xff] %vm253_vm0, %v2263_v2  ;;  %v2508_v47 = vsub.f32 %v2246_v59, %v2263_v2  ;;  %v784_v41 = vmul.f32 1.442695, %v2509_v38 }
 0x2e1   :  { %v727_v9 = vpop.xlane.xlu0 %726 }
 0x2e2   :  { %1327 = vst.msk [vmem:[#allocation3 + $0x38] sm:$0xff] %vm253_vm0, %v2268_v5  ;;  %v2282_v13 = vmax.f32 %v2265_v4, %v727_v9  ;;  %v2334_v9 = vld [vmem:[#allocation3 + $0x78] sm:$0xff]  ;;  %v786_v53 = vmul.f32 1.442695, %v2508_v47 }
 0x2e3   :  { %v729_v14 = vpop.xlane.xlu1 %728  ;;  %v941_v47 = vld [vmem:[#allocation4 + $0x38] sm:$0xff] }
 0x2e4   :  { %v2287_v18 = vmax.f32 %v2275_v7, %v729_v14  ;;  %833 = vperm.xlu1 %1793, %v2249_v60   ;;  %1328 = vst.msk [vmem:[#allocation3 + $0x40] sm:$0xff] %vm253_vm0, %v2282_v13 }
 0x2e5   :  { %v731_v23 = vpop.xlane.xlu0 %730 }
 0x2e6   :  { %1329 = vst.msk [vmem:[#allocation3 + $0x48] sm:$0xff] %vm253_vm0, %v2287_v18  ;;  %853 = vperm.xlu0 %1792, %v2287_v18   ;;  %v2302_v27 = vmax.f32 %v2284_v17, %v731_v23  ;;  %v2513_v54 = vsub.f32 %v2275_v7, %v2287_v18 }
 0x2e7   :  { %v733_v30 = vpop.xlane.xlu1 %732 }
 0x2e8   :  { %v2307_v34 = vmax.f32 %v2294_v22, %v733_v30  ;;  %828 = vperm.xlu1 %1793, %v2244_v57   ;;  %1330 = vst.msk [vmem:[#allocation3 + $0x50] sm:$0xff] %vm253_vm0, %v2302_v27  ;;  %v2512_v57 = vsub.f32 %v2284_v17, %v2302_v27  ;;  %v792_v60 = vmul.f32 1.442695, %v2513_v54 }
 0x2e9   :  { %v735_v42 = vpop.xlane.xlu0 %734 }
 0x2ea   :  { %1331 = vst.msk [vmem:[#allocation3 + $0x58] sm:$0xff] %vm253_vm0, %v2307_v34  ;;  %863 = vperm.xlu0 %1792, %v2307_v34   ;;  %v2322_v50 = vmax.f32 %v2304_v31, %v735_v42  ;;  %v794_v59 = vmul.f32 1.442695, %v2512_v57 }
 0x2eb   :  { %v737_v55 = vpop.xlane.xlu1 %736 }
 0x2ec   :  { %v2327_v63 = vmax.f32 %v2314_v39, %v737_v55  ;;  %843 = vperm.xlu1 %1793, %v2268_v5   ;;  %1332 = vst.msk [vmem:[#allocation3 + $0x60] sm:$0xff] %vm253_vm0, %v2322_v50 }
 0x2ed   :  { %v739_v14 = vpop.xlane.xlu0 %738 }
 0x2ee   :  { %1333 = vst.msk [vmem:[#allocation3 + $0x68] sm:$0xff] %vm253_vm0, %v2327_v63  ;;  %873 = vperm.xlu0 %1792, %v2327_v63   ;;  %v2342_v30 = vmax.f32 %v2324_v58, %v739_v14 }
 0x2ef   :  { %v741_v42 = vpop.xlane.xlu1 %740 }
 0x2f0   :  { %v2345_v55 = vmax.f32 %v2334_v9, %v741_v42  ;;  %838 = vperm.xlu1 %1793, %v2263_v2   ;;  %1334 = vst.msk [vmem:[#allocation3 + $0x70] sm:$0xff] %vm253_vm0, %v2342_v30  ;;  %v2516_v7 = vsub.f32 %v2324_v58, %v2342_v30 }
 0x2f2   :  { %1335 = vst.msk [vmem:[#allocation3 + $0x78] sm:$0xff] %vm253_vm0, %v2345_v55  ;;  %883 = vperm.xlu0 %1792, %v2345_v55   ;;  %v802_v18 = vmul.f32 1.442695, %v2516_v7  ;;  %v2518_v58 = vsub.f32 %v2334_v9, %v2345_v55 }
 0x2f4   :  { %848 = vperm.xlu1 %1793, %v2282_v13  }
 0x2f8   :  { %858 = vperm.xlu1 %1793, %v2302_v27  }
 0x2fc   :  { %868 = vperm.xlu1 %1793, %v2322_v50  }
 0x300   :  { %878 = vperm.xlu1 %1793, %v2342_v30   ;;  %v804_v30 = vmul.f32 1.442695, %v2518_v58 }
 0x34f   :  { %v809_v14 = vpop.permute.xlu0 %808 }
 0x350   :  { %v886_v42 = vsub.f32 %v2138_v8, %v809_v14 }
 0x352   :  { %v902_v46 = vmul.f32 1.442695, %v886_v42 }
 0x353   :  { %v814_v3 = vpop.permute.xlu1 %813 }
 0x354   :  { %1794 = vpow2.f32 %v902_v46  ;;  %v887_v23 = vsub.f32 %v2146_v12, %v814_v3 }
 0x356   :  { %v904_v26 = vmul.f32 1.442695, %v887_v23 }
 0x357   :  { %v824_v35 = vpop.permute.xlu1 %823 }
 0x358   :  { %1796 = vpow2.f32 %v904_v26  ;;  %v889_v11 = vsub.f32 %v2142_v10, %v824_v35 }
 0x35a   :  { %v908_v21 = vmul.f32 1.442695, %v889_v11 }
 0x35b   :  { %v819_v1 = vpop.permute.xlu1 %818 }
 0x35c   :  { %1798 = vpow2.f32 %v908_v21  ;;  %v888_v6 = vsub.f32 %v2149_v0, %v819_v1 }
 0x35e   :  { %v906_v48 = vmul.f32 1.442695, %v888_v6 }
 0x35f   :  { %v834_v61 = vpop.permute.xlu1 %833 }
 0x360   :  { %1800 = vpow2.f32 %v906_v48  ;;  %v891_v8 = vsub.f32 %v2154_v15, %v834_v61 }
 0x361   :  { %v1795_v14 = vpop.eup %1794  ;;  %v854_v42 = vpop.permute.xlu0 %853 }
 0x362   :  { %v912_v46 = vmul.f32 1.442695, %v891_v8  ;;  %966 = vadd.xlane.f32.xlu1 %v1795_v14  ;;  %1757 = vmatprep.mubr.f32.mxu1 %v1795_v14  ;;  %v895_v15 = vsub.f32 %v2170_v24, %v854_v42 }
 0x363   :  { %v829_v12 = vpop.permute.xlu1 %828 }
 0x364   :  { %1802 = vpow2.f32 %v912_v46  ;;  %v890_v26 = vsub.f32 %v2157_v16, %v829_v12  ;;  %v920_v23 = vmul.f32 1.442695, %v895_v15 }
 0x365   :  { %v1797_v10 = vpop.eup %1796  ;;  %v864_v35 = vpop.permute.xlu0 %863 }
 0x366   :  { %v910_v11 = vmul.f32 1.442695, %v890_v26  ;;  %968 = vadd.xlane.f32.xlu0 %v1797_v10  ;;  %1758 = vmatmul.mubr.f32.vlgmr.msra.gmra.mxu1 %v1797_v10  ;;  %v897_v8 = vsub.f32 %v2178_v28, %v864_v35 }
 0x367   :  { %v844_v0 = vpop.permute.xlu1 %843 }
 0x368   :  { %1804 = vpow2.f32 %v910_v11  ;;  %v893_v48 = vsub.f32 %v2162_v19, %v844_v0  ;;  %v924_v42 = vmul.f32 1.442695, %v897_v8 }
 0x369   :  { %v1799_v1 = vpop.eup %1798  ;;  %v874_v21 = vpop.permute.xlu0 %873 }
 0x36a   :  { %v916_v61 = vmul.f32 1.442695, %v893_v48  ;;  %972 = vadd.xlane.f32.xlu1 %v1799_v1  ;;  %v899_v12 = vsub.f32 %v2186_v32, %v874_v21 }
 0x36b   :  { %v839_v6 = vpop.permute.xlu1 %838 }
 0x36c   :  { %1806 = vpow2.f32 %v916_v61  ;;  %v892_v3 = vsub.f32 %v2165_v20, %v839_v6  ;;  %v928_v35 = vmul.f32 1.442695, %v899_v12 }
 0x36d   :  { %v1801_v16 = vpop.eup %1800  ;;  %v884_v26 = vpop.permute.xlu0 %883 }
 0x36e   :  { %v914_v14 = vmul.f32 1.442695, %v892_v3  ;;  %970 = vadd.xlane.f32.xlu0 %v1801_v16  ;;  %1760 = vmatprep.mubr.f32.mxu1 %v1801_v16  ;;  %v901_v0 = vsub.f32 %v2194_v36, %v884_v26 }
 0x36f   :  { %v849_v46 = vpop.permute.xlu1 %848  ;;  %1761 = vmatmul.mubr.f32.gmra.mxu1 %v1799_v1 }
 0x370   :  { %1808 = vpow2.f32 %v914_v14  ;;  %v894_v19 = vsub.f32 %v2173_v25, %v849_v46  ;;  %v932_v15 = vmul.f32 1.442695, %v901_v0  ;;  %v776_v46 = vmul.f32 1.442695, %v759_v52  ;;  %v934_v0 = vld [vmem:[#allocation4] sm:$0xff] }
 0x371   :  { %v1803_v24 = vpop.eup %1802  ;;  %1810 = vpow2.f32 %v920_v23  ;;  %v2507_v52 = vsub.f32 %v2203_v40, %v2215_v45  ;;  %v2511_v40 = vsub.f32 %v2256_v62, %v2268_v5  ;;  %v2515_v5 = vsub.f32 %v2294_v22, %v2307_v34 }
 0x372   :  { %v918_v10 = vmul.f32 1.442695, %v894_v19  ;;  %976 = vadd.xlane.f32.xlu1 %v1803_v24 }
 0x373   :  { %v859_v20 = vpop.permute.xlu1 %858  ;;  %v780_v12 = vmul.f32 1.442695, %v2507_v52  ;;  %v788_v45 = vmul.f32 1.442695, %v2511_v40  ;;  %v796_v17 = vmul.f32 1.442695, %v2515_v5 }
 0x374   :  { %1812 = vpow2.f32 %v918_v10  ;;  %v896_v28 = vsub.f32 %v2181_v29, %v859_v20 }
 0x375   :  { %v1805_v11 = vpop.eup %1804  ;;  %1814 = vpow2.f32 %v924_v42  ;;  %v774_v42 = vmul.f32 1.442695, %v758_v44  ;;  %v2510_v44 = vsub.f32 %v2265_v4, %v2282_v13  ;;  %v2514_v13 = vsub.f32 %v2304_v31, %v2322_v50 }
 0x376   :  { %v922_v48 = vmul.f32 1.442695, %v896_v28  ;;  %974 = vadd.xlane.f32.xlu0 %v1805_v11  ;;  %1763 = vmatprep.mubr.f32.mxu1 %v1805_v11  ;;  %v2517_v50 = vsub.f32 %v2314_v39, %v2327_v63 }
 0x377   :  { %v869_v25 = vpop.permute.xlu1 %868  ;;  %1764 = vmatmul.mubr.f32.gmra.mxu1 %v1803_v24  ;;  %v778_v24 = vmul.f32 1.442695, %v760_v56  ;;  %v790_v51 = vmul.f32 1.442695, %v2510_v44  ;;  %v798_v26 = vmul.f32 1.442695, %v2514_v13 }
 0x378   :  { %1816 = vpow2.f32 %v922_v48  ;;  %v898_v32 = vsub.f32 %v2189_v33, %v869_v25  ;;  %v800_v20 = vmul.f32 1.442695, %v2517_v50 }
 0x379   :  { %v1807_v1 = vpop.eup %1806  ;;  %1818 = vpow2.f32 %v928_v35 }
 0x37a   :  { %v926_v61 = vmul.f32 1.442695, %v898_v32  ;;  %980 = vadd.xlane.f32.xlu1 %v1807_v1  ;;  %v935_v32 = vld [vmem:[#allocation4 + $0x8] sm:$0xff] }
 0x37b   :  { %v879_v6 = vpop.permute.xlu1 %878 }
 0x37c   :  { %1820 = vpow2.f32 %v926_v61  ;;  %v900_v29 = vsub.f32 %v2197_v37, %v879_v6  ;;  %v937_v6 = vld [vmem:[#allocation4 + $0x18] sm:$0xff] }
 0x37d   :  { %v1809_v21 = vpop.eup %1808  ;;  %1822 = vpow2.f32 %v932_v15 }
 0x37e   :  { %v1811_v36 = vpop.eup %1810  ;;  %v930_v3 = vmul.f32 1.442695, %v900_v29  ;;  %978 = vadd.xlane.f32.xlu0 %v1809_v21  ;;  %1766 = vmatprep.mubr.f32.mxu1 %v1809_v21 }
 0x37f   :  { %984 = vadd.xlane.f32.xlu1 %v1811_v36  ;;  %1767 = vmatmul.mubr.f32.gmra.mxu1 %v1807_v1 }
 0x380   :  { %1824 = vpow2.f32 %v930_v3  ;;  %v936_v3 = vld [vmem:[#allocation4 + $0x10] sm:$0xff] }
 0x381   :  { %v1813_v16 = vpop.eup %1812  ;;  %1826 = vpow2.f32 %v776_v46 }
 0x382   :  { %v1815_v33 = vpop.eup %1814  ;;  %982 = vadd.xlane.f32.xlu0 %v1813_v16  ;;  %1769 = vmatprep.mubr.f32.mxu1 %v1813_v16  ;;  %1828 = vpow2.f32 %v778_v24 }
 0x383   :  { %988 = vadd.xlane.f32.xlu1 %v1815_v33  ;;  %1770 = vmatmul.mubr.f32.gmra.mxu1 %v1811_v36  ;;  %1830 = vpow2.f32 %v774_v42  ;;  %v938_v42 = vld [vmem:[#allocation4 + $0x20] sm:$0xff] }
 0x384   :  { %1832 = vpow2.f32 %v782_v49 }
 0x385   :  { %v1817_v23 = vpop.eup %1816  ;;  %1834 = vpow2.f32 %v780_v12 }
 0x386   :  { %v1819_v8 = vpop.eup %1818  ;;  %986 = vadd.xlane.f32.xlu0 %v1817_v23  ;;  %1772 = vmatprep.mubr.f32.mxu1 %v1817_v23  ;;  %1836 = vpow2.f32 %v786_v53 }
 0x387   :  { %992 = vadd.xlane.f32.xlu1 %v1819_v8  ;;  %1773 = vmatmul.mubr.f32.gmra.mxu1 %v1815_v33  ;;  %1838 = vpow2.f32 %v784_v41 }
 0x388   :  { %1840 = vpow2.f32 %v790_v51 }
 0x389   :  { %v1821_v37 = vpop.eup %1820  ;;  %1842 = vpow2.f32 %v788_v45  ;;  %v943_v45 = vld [vmem:[#allocation4 + $0x48] sm:$0xff] }
 0x38a   :  { %v1823_v14 = vpop.eup %1822  ;;  %990 = vadd.xlane.f32.xlu0 %v1821_v37  ;;  %1775 = vmatprep.mubr.f32.mxu1 %v1821_v37  ;;  %1844 = vpow2.f32 %v794_v59  ;;  %v939_v37 = vld [vmem:[#allocation4 + $0x28] sm:$0xff] }
 0x38b   :  { %996 = vadd.xlane.f32.xlu1 %v1823_v14  ;;  %1776 = vmatmul.mubr.f32.gmra.mxu1 %v1819_v8  ;;  %1846 = vpow2.f32 %v792_v60 }
 0x38c   :  { %1848 = vpow2.f32 %v798_v26 }
 0x38d   :  { %v1825_v19 = vpop.eup %1824  ;;  %1850 = vpow2.f32 %v796_v17 }
 0x38e   :  { %994 = vadd.xlane.f32.xlu0 %v1825_v19  ;;  %1778 = vmatprep.mubr.f32.mxu1 %v1825_v19  ;;  %v1827_v56 = vpop.eup %1826  ;;  %1852 = vpow2.f32 %v802_v18 }
 0x38f   :  { %1779 = vmatmul.mubr.f32.gmra.mxu1 %v1823_v14  ;;  %v1829_v2 = vpop.eup %1828  ;;  %1854 = vpow2.f32 %v800_v20  ;;  %v951_v15 = vmul.f32 %v1827_v56, %v935_v32 }
 0x390   :  { %v1831_v4 = vpop.eup %1830  ;;  %1856 = vpow2.f32 %v804_v30  ;;  %v952_v23 = vmul.f32 %v1829_v2, %v936_v3 }
 0x391   :  { %v2413_v62 = vpop.eup %1832  ;;  %v950_v48 = vmul.f32 %v1831_v4, %v934_v0 }
 0x392   :  { %v1835_v27 = vpop.eup %1834  ;;  %v954_v52 = vmul.f32 %v2413_v62, %v938_v42 }
 0x393   :  { %v2422_v10 = vpop.eup %1836  ;;  %v953_v21 = vmul.f32 %v1835_v27, %v937_v6 }
 0x394   :  { %v1839_v31 = vpop.eup %1838 }
 0x395   :  { %v2428_v22 = vpop.eup %1840  ;;  %v955_v19 = vmul.f32 %v1839_v31, %v939_v37 }
 0x396   :  { %v1843_v34 = vpop.eup %1842 }
 0x397   :  { %v2434_v28 = vpop.eup %1844  ;;  %v957_v41 = vmul.f32 %v1843_v34, %v941_v47 }
 0x398   :  { %v2437_v11 = vpop.eup %1846 }
 0x399   :  { %v2439_v39 = vpop.eup %1848  ;;  %v959_v54 = vmul.f32 %v2437_v11, %v943_v45 }
 0x39a   :  { %v2443_v63 = vpop.eup %1850 }
 0x39b   :  { %v2445_v35 = vpop.eup %1852 }
 0x39c   :  { %1054 = vperm.xlu1 %1793, %v1827_v56   ;;  %v2449_v9 = vpop.eup %1854  ;;  %v940_v56 = vld [vmem:[#allocation4 + $0x30] sm:$0xff] }
 0x39d   :  { %v2452_v55 = vpop.eup %1856  ;;  %v956_v59 = vmul.f32 %v2422_v10, %v940_v56 }
 0x3a0   :  { %1059 = vperm.xlu1 %1793, %v1829_v2  }
 0x3a4   :  { %1069 = vperm.xlu1 %1793, %v2413_v62   ;;  %1049 = vperm.xlu0 %1792, %v1831_v4   ;;  %v942_v4 = vld [vmem:[#allocation4 + $0x40] sm:$0xff]  ;;  %v945_v62 = vld [vmem:[#allocation4 + $0x58] sm:$0xff] }
 0x3a5   :  { %v961_v18 = vmul.f32 %v2443_v63, %v945_v62 }
 0x3a8   :  { %1079 = vperm.xlu1 %1793, %v2422_v10   ;;  %1064 = vperm.xlu0 %1792, %v1835_v27   ;;  %v958_v27 = vmul.f32 %v2428_v22, %v942_v4 }
 0x3ac   :  { %1089 = vperm.xlu1 %1793, %v2428_v22   ;;  %1074 = vperm.xlu0 %1792, %v1839_v31   ;;  %v944_v31 = vld [vmem:[#allocation4 + $0x50] sm:$0xff] }
 0x3b0   :  { %1099 = vperm.xlu1 %1793, %v2434_v28   ;;  %1084 = vperm.xlu0 %1792, %v1843_v34   ;;  %v947_v34 = vld [vmem:[#allocation4 + $0x68] sm:$0xff] }
 0x3b1   :  { %v963_v0 = vmul.f32 %v2449_v9, %v947_v34 }
 0x3b4   :  { %1109 = vperm.xlu1 %1793, %v2439_v39   ;;  %1094 = vperm.xlu0 %1792, %v2437_v11   ;;  %v960_v11 = vmul.f32 %v2434_v28, %v944_v31 }
 0x3b8   :  { %1119 = vperm.xlu1 %1793, %v2445_v35   ;;  %1104 = vperm.xlu0 %1792, %v2443_v63   ;;  %v946_v63 = vld [vmem:[#allocation4 + $0x60] sm:$0xff] }
 0x3b9   :  { %v962_v6 = vmul.f32 %v2439_v39, %v946_v63 }
 0x3bc   :  { %1114 = vperm.xlu0 %1792, %v2449_v9  }
 0x3c0   :  { %1124 = vperm.xlu0 %1792, %v2452_v55  }
 0x3eb   :  { %v967_v25 = vpop.xlane.xlu1 %966 }
 0x3ec   :  { %v998_v1 = vadd.f32 %v967_v25, %v950_v48 }
 0x3ee   :  { %1015 = vst.msk [vmem:[#allocation4] sm:$0xff] %vm253_vm0, %v998_v1  ;;  %v949_v1 = vld [vmem:[#allocation4 + $0x78] sm:$0xff] }
 0x3ef   :  { %v969_v61 = vpop.xlane.xlu0 %968 }
 0x3f0   :  { %v999_v29 = vadd.f32 %v969_v61, %v951_v15 }
 0x3f2   :  { %1016 = vst.msk [vmem:[#allocation4 + $0x8] sm:$0xff] %vm253_vm0, %v999_v29 }
 0x3f3   :  { %v973_v36 = vpop.xlane.xlu1 %972 }
 0x3f4   :  { %v1001_v16 = vadd.f32 %v973_v36, %v953_v21  ;;  %v965_v21 = vmul.f32 %v2452_v55, %v949_v1  ;;  %v948_v36 = vld [vmem:[#allocation4 + $0x70] sm:$0xff] }
 0x3f5   :  { %v1355_v33 = vld [vmem:[#allocation4] sm:$0xff] }
 0x3f6   :  { %1018 = vst.msk [vmem:[#allocation4 + $0x18] sm:$0xff] %vm253_vm0, %v1001_v16  ;;  %1858 = vrcp.f32 %v1355_v33 }
 0x3f7   :  { %v971_v8 = vpop.xlane.xlu0 %970 }
 0x3f8   :  { %v1000_v14 = vadd.f32 %v971_v8, %v952_v23  ;;  %v964_v8 = vmul.f32 %v2445_v35, %v948_v36 }
 0x3f9   :  { %v1356_v46 = vld [vmem:[#allocation4 + $0x8] sm:$0xff] }
 0x3fa   :  { %1017 = vst.msk [vmem:[#allocation4 + $0x10] sm:$0xff] %vm253_vm0, %v1000_v14  ;;  %1860 = vrcp.f32 %v1356_v46 }
 0x3fb   :  { %v977_v24 = vpop.xlane.xlu1 %976 }
 0x3fc   :  { %v1003_v43 = vadd.f32 %v977_v24, %v955_v19 }
 0x3fd   :  { %v1358_v49 = vld [vmem:[#allocation4 + $0x18] sm:$0xff] }
 0x3fe   :  { %1020 = vst.msk [vmem:[#allocation4 + $0x28] sm:$0xff] %vm253_vm0, %v1003_v43  ;;  %1862 = vrcp.f32 %v1358_v49 }
 0x3ff   :  { %v975_v12 = vpop.xlane.xlu0 %974 }
 0x400   :  { %v1002_v53 = vadd.f32 %v975_v12, %v954_v52 }
 0x401   :  { %v1357_v38 = vld [vmem:[#allocation4 + $0x10] sm:$0xff] }
 0x402   :  { %1019 = vst.msk [vmem:[#allocation4 + $0x20] sm:$0xff] %vm253_vm0, %v1002_v53  ;;  %1864 = vrcp.f32 %v1357_v38 }
 0x403   :  { %v1859_v44 = vpop.eup %1858  ;;  %v981_v51 = vpop.xlane.xlu1 %980 }
 0x404   :  { %v1005_v40 = vadd.f32 %v981_v51, %v957_v41  ;;  %1389 = vperm.xlu1 %1793, %v1859_v44  }
 0x405   :  { %v1360_v57 = vld [vmem:[#allocation4 + $0x28] sm:$0xff] }
 0x406   :  { %1022 = vst.msk [vmem:[#allocation4 + $0x38] sm:$0xff] %vm253_vm0, %v1005_v40  ;;  %1866 = vrcp.f32 %v1360_v57 }
 0x407   :  { %v1861_v2 = vpop.eup %1860  ;;  %v979_v60 = vpop.xlane.xlu0 %978 }
 0x408   :  { %v985_v13 = vpop.xlane.xlu1 %984  ;;  %v1004_v26 = vadd.f32 %v979_v60, %v956_v59  ;;  %1394 = vperm.xlu0 %1792, %v1861_v2  }
 0x409   :  { %v1007_v5 = vadd.f32 %v985_v13, %v959_v54  ;;  %v1359_v17 = vld [vmem:[#allocation4 + $0x20] sm:$0xff] }
 0x40a   :  { %1021 = vst.msk [vmem:[#allocation4 + $0x30] sm:$0xff] %vm253_vm0, %v1004_v26  ;;  %1868 = vrcp.f32 %v1359_v17 }
 0x40b   :  { %v1863_v7 = vpop.eup %1862  ;;  %1024 = vst.msk [vmem:[#allocation4 + $0x48] sm:$0xff] %vm253_vm0, %v1007_v5  ;;  %v983_v10 = vpop.xlane.xlu0 %982 }
 0x40c   :  { %v989_v50 = vpop.xlane.xlu1 %988  ;;  %v1006_v20 = vadd.f32 %v983_v10, %v958_v27  ;;  %1404 = vperm.xlu0 %1792, %v1863_v7  }
 0x40d   :  { %v1009_v58 = vadd.f32 %v989_v50, %v961_v18  ;;  %v1362_v30 = vld [vmem:[#allocation4 + $0x38] sm:$0xff] }
 0x40e   :  { %1023 = vst.msk [vmem:[#allocation4 + $0x40] sm:$0xff] %vm253_vm0, %v1006_v20  ;;  %1870 = vrcp.f32 %v1362_v30 }
 0x40f   :  { %v1865_v22 = vpop.eup %1864  ;;  %1026 = vst.msk [vmem:[#allocation4 + $0x58] sm:$0xff] %vm253_vm0, %v1009_v58  ;;  %v987_v48 = vpop.xlane.xlu0 %986 }
 0x410   :  { %v993_v25 = vpop.xlane.xlu1 %992  ;;  %v1008_v32 = vadd.f32 %v987_v48, %v960_v11  ;;  %1399 = vperm.xlu1 %1793, %v1865_v22  }
 0x411   :  { %v1011_v15 = vadd.f32 %v993_v25, %v963_v0  ;;  %v1361_v61 = vld [vmem:[#allocation4 + $0x30] sm:$0xff] }
 0x412   :  { %1025 = vst.msk [vmem:[#allocation4 + $0x50] sm:$0xff] %vm253_vm0, %v1008_v32  ;;  %v1364_v29 = vld [vmem:[#allocation4 + $0x48] sm:$0xff]  ;;  %1872 = vrcp.f32 %v1361_v61 }
 0x413   :  { %v1867_v28 = vpop.eup %1866  ;;  %1028 = vst.msk [vmem:[#allocation4 + $0x68] sm:$0xff] %vm253_vm0, %v1011_v15  ;;  %v991_v9 = vpop.xlane.xlu0 %990  ;;  %1874 = vrcp.f32 %v1364_v29 }
 0x414   :  { %v997_v3 = vpop.xlane.xlu1 %996  ;;  %v1010_v16 = vadd.f32 %v991_v9, %v962_v6  ;;  %1414 = vperm.xlu0 %1792, %v1867_v28  }
 0x415   :  { %v1013_v33 = vadd.f32 %v997_v3, %v965_v21  ;;  %v1363_v23 = vld [vmem:[#allocation4 + $0x40] sm:$0xff] }
 0x416   :  { %1027 = vst.msk [vmem:[#allocation4 + $0x60] sm:$0xff] %vm253_vm0, %v1010_v16  ;;  %v1366_v39 = vld [vmem:[#allocation4 + $0x58] sm:$0xff]  ;;  %1876 = vrcp.f32 %v1363_v23 }
 0x417   :  { %v1869_v37 = vpop.eup %1868  ;;  %1030 = vst.msk [vmem:[#allocation4 + $0x78] sm:$0xff] %vm253_vm0, %v1013_v33  ;;  %v995_v14 = vpop.xlane.xlu0 %994  ;;  %1878 = vrcp.f32 %v1366_v39 }
 0x418   :  { %v1012_v55 = vadd.f32 %v995_v14, %v964_v8  ;;  %1409 = vperm.xlu1 %1793, %v1869_v37   ;;  %v1055_v56 = vpop.permute.xlu1 %1054 }
 0x419   :  { %v1365_v46 = vld [vmem:[#allocation4 + $0x50] sm:$0xff]  ;;  %v1128_v11 = vmul.f32 0.0, %v1055_v56 }
 0x41a   :  { %1029 = vst.msk [vmem:[#allocation4 + $0x70] sm:$0xff] %vm253_vm0, %v1012_v55  ;;  %v1368_v19 = vld [vmem:[#allocation4 + $0x68] sm:$0xff]  ;;  %1880 = vrcp.f32 %v1365_v46 }
 0x41b   :  { %v1871_v24 = vpop.eup %1870  ;;  %1882 = vrcp.f32 %v1368_v19 }
 0x41c   :  { %1424 = vperm.xlu0 %1792, %v1871_v24   ;;  %v1060_v45 = vpop.permute.xlu1 %1059 }
 0x41d   :  { %v1367_v42 = vld [vmem:[#allocation4 + $0x60] sm:$0xff]  ;;  %v1129_v29 = vmul.f32 0.0, %v1060_v45 }
 0x41e   :  { %v1370_v43 = vld [vmem:[#allocation4 + $0x78] sm:$0xff]  ;;  %1884 = vrcp.f32 %v1367_v42 }
 0x41f   :  { %v1873_v35 = vpop.eup %1872  ;;  %1886 = vrcp.f32 %v1370_v43  ;;  %v1050_v40 = vpop.permute.xlu0 %1049 }
 0x420   :  { %v1875_v49 = vpop.eup %1874  ;;  %1419 = vperm.xlu1 %1793, %v1873_v35   ;;  %v1070_v59 = vpop.permute.xlu1 %1069  ;;  %v1127_v50 = vmul.f32 0.0, %v1050_v40 }
 0x421   :  { %1434 = vperm.xlu0 %1792, %v1875_v49   ;;  %v1369_v52 = vld [vmem:[#allocation4 + $0x70] sm:$0xff]  ;;  %v1131_v39 = vmul.f32 0.0, %v1070_v59 }
 0x422   :  { %1888 = vrcp.f32 %v1369_v52 }
 0x423   :  { %v1877_v12 = vpop.eup %1876  ;;  %v1065_v57 = vpop.permute.xlu0 %1064 }
 0x424   :  { %v1879_v47 = vpop.eup %1878  ;;  %1429 = vperm.xlu1 %1793, %v1877_v12   ;;  %v1080_v54 = vpop.permute.xlu1 %1079  ;;  %v1130_v32 = vmul.f32 0.0, %v1065_v57 }
 0x425   :  { %1444 = vperm.xlu0 %1792, %v1879_v47   ;;  %v1133_v49 = vmul.f32 0.0, %v1080_v54 }
 0x426   :  { %v1759_v62 = vpop.f32.mrf.mxu1 }
 0x427   :  { %v1881_v53 = vpop.eup %1880  ;;  %v1075_v2 = vpop.permute.xlu0 %1074  ;;  %v1289_v48 = vadd.f32 %v1759_v62, %v1128_v11 }
 0x428   :  { %v1883_v38 = vpop.eup %1882  ;;  %1439 = vperm.xlu1 %1793, %v1881_v53   ;;  %v1090_v4 = vpop.permute.xlu1 %1089  ;;  %v1132_v3 = vmul.f32 0.0, %v1075_v2 }
 0x429   :  { %1454 = vperm.xlu0 %1792, %v1883_v38   ;;  %v1209_v17 = vpop.f32.mrf.mxu1 }
 0x42a   :  { %v1288_v34 = vadd.f32 %v1209_v17, %v1127_v50 }
 0x42b   :  { %v1885_v41 = vpop.eup %1884  ;;  %v1085_v60 = vpop.permute.xlu0 %1084 }
 0x42c   :  { %v1887_v44 = vpop.eup %1886  ;;  %1449 = vperm.xlu1 %1793, %v1885_v41   ;;  %v2481_v26 = vpop.permute.xlu1 %1099  ;;  %v1134_v19 = vmul.f32 0.0, %v1085_v60 }
 0x42d   :  { %1464 = vperm.xlu0 %1792, %v1887_v44   ;;  %v1135_v44 = vmul.f32 0.0, %v1090_v4  ;;  %v1137_v54 = vmul.f32 0.0, %v2481_v26 }
 0x42f   :  { %v1889_v51 = vpop.eup %1888  ;;  %v1095_v13 = vpop.permute.xlu0 %1094 }
 0x430   :  { %1459 = vperm.xlu1 %1793, %v1889_v51   ;;  %v2483_v27 = vpop.permute.xlu1 %1109  ;;  %v1762_v7 = vpop.f32.mrf.mxu1  ;;  %v1136_v12 = vmul.f32 0.0, %v1095_v13 }
 0x431   :  { %v1291_v15 = vadd.f32 %v1762_v7, %v1130_v32 }
 0x432   :  { %v1219_v10 = vpop.f32.mrf.mxu1 }
 0x433   :  { %v1105_v5 = vpop.permute.xlu0 %1104  ;;  %v1290_v21 = vadd.f32 %v1219_v10, %v1129_v29 }
 0x434   :  { %v2487_v31 = vpop.permute.xlu1 %1119  ;;  %v1138_v40 = vmul.f32 0.0, %v1105_v5 }
 0x437   :  { %v2485_v18 = vpop.permute.xlu0 %1114  ;;  %v1765_v20 = vpop.f32.mrf.mxu1 }
 0x438   :  { %v1293_v33 = vadd.f32 %v1765_v20, %v1132_v3  ;;  %v1140_v17 = vmul.f32 0.0, %v2485_v18  ;;  %v1139_v20 = vmul.f32 0.0, %v2483_v27 }
 0x439   :  { %v1229_v0 = vpop.f32.mrf.mxu1 }
 0x43a   :  { %v1292_v14 = vadd.f32 %v1229_v0, %v1131_v39 }
 0x43b   :  { %v2489_v58 = vpop.permute.xlu0 %1124 }
 0x43c   :  { %v1142_v11 = vmul.f32 0.0, %v2489_v58 }
 0x43f   :  { %v1768_v63 = vpop.f32.mrf.mxu1 }
 0x440   :  { %v1295_v42 = vadd.f32 %v1768_v63, %v1134_v19  ;;  %v1141_v63 = vmul.f32 0.0, %v2487_v31 }
 0x441   :  { %v1239_v61 = vpop.f32.mrf.mxu1 }
 0x442   :  { %v1294_v47 = vadd.f32 %v1239_v61, %v1133_v49 }
 0x443   :  { %v1771_v9 = vpop.f32.mrf.mxu1 }
 0x444   :  { %v1297_v53 = vadd.f32 %v1771_v9, %v1136_v12 }
 0x445   :  { %v1249_v23 = vpop.f32.mrf.mxu1 }
 0x446   :  { %v1296_v57 = vadd.f32 %v1249_v23, %v1135_v44 }
 0x447   :  { %v1774_v55 = vpop.f32.mrf.mxu1 }
 0x448   :  { %v1299_v59 = vadd.f32 %v1774_v55, %v1138_v40 }
 0x449   :  { %v1259_v43 = vpop.f32.mrf.mxu1 }
 0x44a   :  { %v1298_v10 = vadd.f32 %v1259_v43, %v1137_v54 }
 0x44b   :  { %v1777_v38 = vpop.f32.mrf.mxu1 }
 0x44c   :  { %v1301_v4 = vadd.f32 %v1777_v38, %v1140_v17 }
 0x44d   :  { %v1269_v2 = vpop.f32.mrf.mxu1 }
 0x44e   :  { %v1300_v0 = vadd.f32 %v1269_v2, %v1139_v20 }
 0x44f   :  { %v1780_v50 = vpop.f32.mrf.mxu1 }
 0x450   :  { %v1303_v26 = vadd.f32 %v1780_v50, %v1142_v11 }
 0x47f   :  { %v1390_v30 = vpop.permute.xlu1 %1389 }
 0x480   :  { %v1467_v22 = vmul.f32 %v1390_v30, %v1288_v34 }
 0x482   :  { %1483 = vst [vmem:[#allocation12] sm:$0xff] %v1467_v22 }
 0x483   :  { %v1395_v25 = vpop.permute.xlu0 %1394 }
 0x484   :  { %v1468_v1 = vmul.f32 %v1395_v25, %v1289_v48  ;;  %v1279_v48 = vpop.f32.mrf.mxu1 }
 0x486   :  { %1484 = vst [vmem:[#allocation12 + $0x8] sm:$0xff] %v1468_v1 }
 0x487   :  { %v1405_v6 = vpop.permute.xlu0 %1404 }
 0x488   :  { %v1470_v28 = vmul.f32 %v1405_v6, %v1291_v15  ;;  %v1302_v15 = vadd.f32 %v1279_v48, %v1141_v63 }
 0x48a   :  { %1486 = vst [vmem:[#allocation12 + $0x18] sm:$0xff] %v1470_v28 }
 0x48b   :  { %v1400_v36 = vpop.permute.xlu1 %1399 }
 0x48c   :  { %v1469_v16 = vmul.f32 %v1400_v36, %v1290_v21 }
 0x48e   :  { %1485 = vst [vmem:[#allocation12 + $0x10] sm:$0xff] %v1469_v16 }
 0x48f   :  { %v1415_v8 = vpop.permute.xlu0 %1414 }
 0x490   :  { %v1472_v37 = vmul.f32 %v1415_v8, %v1293_v33 }
 0x492   :  { %1488 = vst [vmem:[#allocation12 + $0x28] sm:$0xff] %v1472_v37 }
 0x493   :  { %v1410_v46 = vpop.permute.xlu1 %1409 }
 0x494   :  { %v1471_v24 = vmul.f32 %v1410_v46, %v1292_v14 }
 0x496   :  { %1487 = vst [vmem:[#allocation12 + $0x20] sm:$0xff] %v1471_v24 }
 0x497   :  { %v1425_v35 = vpop.permute.xlu0 %1424 }
 0x498   :  { %v1474_v52 = vmul.f32 %v1425_v35, %v1295_v42 }
 0x49a   :  { %1490 = vst [vmem:[#allocation12 + $0x38] sm:$0xff] %v1474_v52 }
 0x49b   :  { %v1420_v41 = vpop.permute.xlu1 %1419 }
 0x49c   :  { %v1473_v51 = vmul.f32 %v1420_v41, %v1294_v47  ;;  %v1435_v56 = vpop.permute.xlu0 %1434 }
 0x49d   :  { %v1476_v45 = vmul.f32 %v1435_v56, %v1297_v53 }
 0x49e   :  { %1489 = vst [vmem:[#allocation12 + $0x30] sm:$0xff] %v1473_v51 }
 0x49f   :  { %1492 = vst [vmem:[#allocation12 + $0x48] sm:$0xff] %v1476_v45  ;;  %v1430_v60 = vpop.permute.xlu1 %1429 }
 0x4a0   :  { %v1475_v62 = vmul.f32 %v1430_v60, %v1296_v57  ;;  %v1445_v13 = vpop.permute.xlu0 %1444 }
 0x4a1   :  { %v1478_v7 = vmul.f32 %v1445_v13, %v1299_v59 }
 0x4a2   :  { %1491 = vst [vmem:[#allocation12 + $0x40] sm:$0xff] %v1475_v62 }
 0x4a3   :  { %1494 = vst [vmem:[#allocation12 + $0x58] sm:$0xff] %v1478_v7  ;;  %v1440_v5 = vpop.permute.xlu1 %1439 }
 0x4a4   :  { %v1477_v34 = vmul.f32 %v1440_v5, %v1298_v10  ;;  %v1455_v30 = vpop.permute.xlu0 %1454 }
 0x4a5   :  { %v1480_v22 = vmul.f32 %v1455_v30, %v1301_v4 }
 0x4a6   :  { %1493 = vst [vmem:[#allocation12 + $0x50] sm:$0xff] %v1477_v34 }
 0x4a7   :  { %1496 = vst [vmem:[#allocation12 + $0x68] sm:$0xff] %v1480_v22  ;;  %v1450_v18 = vpop.permute.xlu1 %1449 }
 0x4a8   :  { %v1479_v25 = vmul.f32 %v1450_v18, %v1300_v0  ;;  %v1465_v32 = vpop.permute.xlu0 %1464 }
 0x4a9   :  { %v1482_v1 = vmul.f32 %v1465_v32, %v1303_v26 }
 0x4aa   :  { %1495 = vst [vmem:[#allocation12 + $0x60] sm:$0xff] %v1479_v25 }
 0x4ab   :  { %1498 = vst [vmem:[#allocation12 + $0x78] sm:$0xff] %v1482_v1  ;;  %v1460_v27 = vpop.permute.xlu1 %1459 }
 0x4ac   :  { %v1481_v61 = vmul.f32 %v1460_v27, %v1302_v15 }
 0x4ae   :  { %1497 = vst [vmem:[#allocation12 + $0x70] sm:$0xff] %v1481_v61 }
 0x4af   :  { %1961 = shalt.err (!%p1958_p5)
}
 0x4b0   :  { %1510 = dma.vmem_to_hbm [thread:$0]  %s1505_s2, 2048, %s2505_s3, [#allocation8], %s1978_s17, %s1978_s17, %s1979_s18  }
 0x4b1   :  { %1974 = dma.done.wait [#allocation8], 2048  }
 0x4b2   :  { %1975 = vsyncadd [#allocation8], 4294965248 }
 0x4b3   :  { %1514 = vsyncpa [#allocation7], 1 }
 0x4b4   :  { %1515 = vsyncpa [#allocation10], 1 }
 0x4b5   :  { %1516 = vsyncpa [#allocation8], 1 }

</bundles_post_ra>
